<compile_context>
chip_gen: v7x
topology: tpu7x:2x2x1
jax: 0.10.0
libtpu: 0.0.40
codegen_flags: <defaults>
</compile_context>

<pallas_src>
import functools

import jax
import jax.numpy as jnp
from jax import lax
from jax.experimental import pallas as pl
from jax.experimental.pallas import tpu as pltpu


# ----------------------------------------------------------------------------
# helpers
# ----------------------------------------------------------------------------
def _round_up(x, m):
    return ((x + m - 1) // m) * m


def _tile_targets():
    """Generation-aware (TM, TN, TK) tile targets."""
    try:
        kind = jax.devices()[0].device_kind.lower()
    except Exception:
        kind = ""
    if "v5" in kind:          # 4x128^2 MXU, single vst slot: 128-wide N/K tiles
        return 512, 128, 512
    return 512, 256, 512      # v6e / v7x: 2x256^2 MXU


def _pick_tile(dim, target, align):
    """Return (tile, padded_dim) with tile % align == 0 and tile | padded_dim."""
    if dim <= target:
        t = _round_up(dim, align)
        return t, t
    return target, _round_up(dim, target)


# conservative: <= default scoped VMEM on v6e/v7x, under physical on all gens
_VMEM_LIMIT = 32 * 1024 * 1024


# ----------------------------------------------------------------------------
# Kernel 1: tiled conv-as-matmul  (bias + optional post-ReLU)
# ----------------------------------------------------------------------------
def _conv_kernel(x_ref, w_ref, b_ref, o_ref, acc_ref, *, post_relu):
    k = pl.program_id(2)

    @pl.when(k == 0)
    def _():
        acc_ref[...] = jnp.zeros_like(acc_ref)

    acc_ref[...] += jnp.dot(x_ref[...], w_ref[...],
                            preferred_element_type=jnp.float32)

    @pl.when(k == pl.num_programs(2) - 1)
    def _():
        acc = acc_ref[...] + b_ref[...]          # (1, tn) broadcasts over rows
        if post_relu:
            acc = jnp.maximum(acc, 0.0)
        o_ref[...] = acc.astype(o_ref.dtype)


def _conv_matmul(xcol, wmat, bias, *, post_relu):
    """xcol: (M, K) f32, wmat: (K, N) f32, bias: (N,) f32 -> (M, N) f32."""
    M, K = xcol.shape
    N = wmat.shape[1]
    TM, TN, TK = _tile_targets()
    tm, Mp = _pick_tile(M, TM, 8)
    tn, Np = _pick_tile(N, TN, 128)
    tk, Kp = _pick_tile(K, TK, 128)

    x_p = jnp.pad(xcol, ((0, Mp - M), (0, Kp - K))).astype(jnp.bfloat16)
    w_p = jnp.pad(wmat, ((0, Kp - K), (0, Np - N))).astype(jnp.bfloat16)
    b_p = jnp.pad(bias, ((0, Np - N),)).astype(jnp.float32).reshape(1, Np)

    grid = (Mp // tm, Np // tn, Kp // tk)
    out = pl.pallas_call(
        functools.partial(_conv_kernel, post_relu=post_relu),
        out_shape=jax.ShapeDtypeStruct((Mp, Np), jnp.float32),
        grid_spec=pltpu.PrefetchScalarGridSpec(
            num_scalar_prefetch=0,
            grid=grid,
            in_specs=[
                pl.BlockSpec((tm, tk), lambda i, j, k: (i, k)),
                pl.BlockSpec((tk, tn), lambda i, j, k: (k, j)),
                pl.BlockSpec((1, tn), lambda i, j, k: (0, j)),
            ],
            out_specs=pl.BlockSpec((tm, tn), lambda i, j, k: (i, j)),
            scratch_shapes=[pltpu.VMEM((tm, tn), jnp.float32)],
        ),
        compiler_params=pltpu.CompilerParams(
            dimension_semantics=("parallel", "parallel", "arbitrary"),
            vmem_limit_bytes=_VMEM_LIMIT,
        ),
    )(x_p, w_p, b_p)
    return out[:M, :N]


# ----------------------------------------------------------------------------
# Kernel 2: fused residual layer
#   out = x + relu(  relu(x) @ W3  ) @ W1   [+ final-stack ReLU]
# (K-reduction of the 3x3 conv accumulates in VMEM; 1x1 conv, residual add and
#  optional ReLU happen in the epilogue with W1 resident in VMEM.)
# ----------------------------------------------------------------------------
def _res_kernel(x_ref, w3_ref, w1_ref, r_ref, o_ref, acc_ref, *, post_relu):
    k = pl.program_id(1)

    @pl.when(k == 0)
    def _():
        acc_ref[...] = jnp.zeros_like(acc_ref)

    acc_ref[...] += jnp.dot(x_ref[...], w3_ref[...],
                            preferred_element_type=jnp.float32)

    @pl.when(k == pl.num_programs(1) - 1)
    def _():
        h = jnp.maximum(acc_ref[...], 0.0).astype(jnp.bfloat16)
        out = jnp.dot(h, w1_ref[...], preferred_element_type=jnp.float32)
        out = out + r_ref[...]
        if post_relu:
            out = jnp.maximum(out, 0.0)
        o_ref[...] = out.astype(o_ref.dtype)


# ----------------------------------------------------------------------------
# im2col glue (plain JAX) + conv / residual wrappers
# ----------------------------------------------------------------------------
def _im2col(x_nhwc, kh, kw, stride, pad):
    n, h, w, c = x_nhwc.shape
    xp = jnp.pad(x_nhwc, ((0, 0), (pad, pad), (pad, pad), (0, 0)))
    ho = (h + 2 * pad - kh) // stride + 1
    wo = (w + 2 * pad - kw) // stride + 1
    cols = []
    for i in range(kh):
        for j in range(kw):
            cols.append(xp[:, i:i + stride * ho:stride, j:j + stride * wo:stride, :])
    patches = jnp.concatenate(cols, axis=-1)          # (N, Ho, Wo, kh*kw*C)
    return patches.reshape(n * ho * wo, kh * kw * c), (n, ho, wo)


def conv2d_pallas(x_nhwc, w_oihw, bias, *, stride, pad, post_relu=False):
    """Conv2d with PyTorch OIHW weights as a tiled Pallas matmul."""
    cout, cin, kh, kw = w_oihw.shape
    xcol, (n, ho, wo) = _im2col(x_nhwc, kh, kw, stride, pad)
    # match im2col ordering: (kh, kw, cin) with cin fastest, Cout columns
    wmat = jnp.transpose(w_oihw, (2, 3, 1, 0)).reshape(kh * kw * cin, cout)
    y = _conv_matmul(xcol, wmat, bias, post_relu=post_relu)
    return y.reshape(n, ho, wo, cout)


def residual_layer_pallas(x_nhwc, w3_oihw, w1_oihw, *, post_relu):
    """One Residual block (3x3 + 1x1 fused), stride 1, pad 1, no bias."""
    n, h, w, cin = x_nhwc.shape
    cres = w3_oihw.shape[0]
    cout = w1_oihw.shape[0]

    # pre-ReLU on the compact NHWC tensor (not the duplicated patch matrix)
    xcol, _ = _im2col(jnp.maximum(x_nhwc, 0.0), 3, 3, 1, 1)
    M, K = xcol.shape

    TM, _, TK = _tile_targets()
    tm, Mp = _pick_tile(M, TM, 8)
    tk, Kp = _pick_tile(K, TK, 128)
    cres_p = _round_up(cres, 128)
    cout_p = _round_up(cout, 128)

    x_p = jnp.pad(xcol, ((0, Mp - M), (0, Kp - K))).astype(jnp.bfloat16)
    w3mat = jnp.transpose(w3_oihw, (2, 3, 1, 0)).reshape(K, cres)
    w3_p = jnp.pad(w3mat, ((0, Kp - K), (0, cres_p - cres))).astype(jnp.bfloat16)
    w1mat = w1_oihw.reshape(cout, cres).T                      # (cres, cout)
    w1_p = jnp.pad(w1mat, ((0, cres_p - cres), (0, cout_p - cout))).astype(jnp.bfloat16)
    r_p = jnp.pad(x_nhwc.reshape(M, cin),
                  ((0, Mp - M), (0, cout_p - cin))).astype(jnp.float32)

    grid = (Mp // tm, Kp // tk)
    out = pl.pallas_call(
        functools.partial(_res_kernel, post_relu=post_relu),
        out_shape=jax.ShapeDtypeStruct((Mp, cout_p), jnp.float32),
        grid_spec=pltpu.PrefetchScalarGridSpec(
            num_scalar_prefetch=0,
            grid=grid,
            in_specs=[
                pl.BlockSpec((tm, tk), lambda i, k: (i, k)),
                pl.BlockSpec((tk, cres_p), lambda i, k: (k, 0)),
                pl.BlockSpec((cres_p, cout_p), lambda i, k: (0, 0)),
                pl.BlockSpec((tm, cout_p), lambda i, k: (i, 0)),
            ],
            out_specs=pl.BlockSpec((tm, cout_p), lambda i, k: (i, 0)),
            scratch_shapes=[pltpu.VMEM((tm, cres_p), jnp.float32)],
        ),
        compiler_params=pltpu.CompilerParams(
            dimension_semantics=("parallel", "arbitrary"),
            vmem_limit_bytes=_VMEM_LIMIT,
        ),
    )(x_p, w3_p, w1_p, r_p)
    return out[:M, :cout].reshape(n, h, w, cout)


# ----------------------------------------------------------------------------
# Encoder forward (matches the PyTorch module graph)
# ----------------------------------------------------------------------------
def encoder_forward(params, x_nchw):
    x = jnp.transpose(x_nchw, (0, 2, 3, 1))                       # NCHW -> NHWC
    # conv1 (4x4 s2 p1) + ReLU
    x = conv2d_pallas(x, params["conv1_w"], params["conv1_b"],
                      stride=2, pad=1, post_relu=True)
    # conv2 (4x4 s2 p1) + ReLU
    x = conv2d_pallas(x, params["conv2_w"], params["conv2_b"],
                      stride=2, pad=1, post_relu=True)
    # conv3 (3x3 s1 p1), no activation (ResidualStack applies ReLU internally)
    x = conv2d_pallas(x, params["conv3_w"], params["conv3_b"],
                      stride=1, pad=1)
    # residual stack: each layer fully fused; final-stack ReLU fused on last
    n_layers = len(params["res"])
    if n_layers == 0:
        x = jnp.maximum(x, 0.0)
    for li, (w3, w1) in enumerate(params["res"]):
        x = residual_layer_pallas(x, w3, w1, post_relu=(li == n_layers - 1))
    return jnp.transpose(x, (0, 3, 1, 2))                         # NHWC -> NCHW


# ----------------------------------------------------------------------------
# Pure-JAX reference (lax.conv) for correctness checking
# ----------------------------------------------------------------------------
def _ref_conv(x, w, b, stride, pad):
    y = lax.conv_general_dilated(
        x, w, (stride, stride), ((pad, pad), (pad, pad)),
        dimension_numbers=("NCHW", "OIHW", "NCHW"))
    if b is not None:
        y = y + b.reshape(1, -1, 1, 1)
    return y


def ref_encoder(params, x):
    x = jax.nn.relu(_ref_conv(x, params["conv1_w"], params["conv1_b"], 2, 1))
    x = jax.nn.relu(_ref_conv(x, params["conv2_w"], params["conv2_b"], 2, 1))
    x = _ref_conv(x, params["conv3_w"], params["conv3_b"], 1, 1)
    for w3, w1 in params["res"]:
        h = _ref_conv(jax.nn.relu(x), w3, None, 1, 1)
        x = x + _ref_conv(jax.nn.relu(h), w1, None, 1, 0)
    return jax.nn.relu(x)


# ----------------------------------------------------------------------------
def make_params(key, in_channels, num_hiddens, num_residual_layers,
                num_residual_hiddens):
    nh2 = num_hiddens // 2
    keys = jax.random.split(key, 6 + 2 * num_residual_layers)
    p = {
        "conv1_w": 0.1 * jax.random.normal(keys[0], (nh2, in_channels, 4, 4), jnp.float32),
        "conv1_b": 0.1 * jax.random.normal(keys[1], (nh2,), jnp.float32),
        "conv2_w": 0.1 * jax.random.normal(keys[2], (num_hiddens, nh2, 4, 4), jnp.float32),
        "conv2_b": 0.1 * jax.random.normal(keys[3], (num_hiddens,), jnp.float32),
        "conv3_w": 0.1 * jax.random.normal(keys[4], (num_hiddens, num_hiddens, 3, 3), jnp.float32),
        "conv3_b": 0.1 * jax.random.normal(keys[5], (num_hiddens,), jnp.float32),
        "res": [],
    }
    for li in range(num_residual_layers):
        w3 = 0.1 * jax.random.normal(keys[6 + 2 * li],
                                     (num_residual_hiddens, num_hiddens, 3, 3), jnp.float32)
        w1 = 0.1 * jax.random.normal(keys[7 + 2 * li],
                                     (num_hiddens, num_residual_hiddens, 1, 1), jnp.float32)
        p["res"].append((w3, w1))
    return p


if __name__ == "__main__":
    in_channels = 4
    num_hiddens = 32
    num_residual_layers = 2
    num_residual_hiddens = 8
    batch, spatial = 2, 16

    key = jax.random.PRNGKey(0)
    k_x, k_p = jax.random.split(key)
    x = jax.random.normal(k_x, (batch, in_channels, spatial, spatial), jnp.float32)
    params = make_params(k_p, in_channels, num_hiddens,
                         num_residual_layers, num_residual_hiddens)

    fwd = jax.jit(encoder_forward)
    out = jax.block_until_ready(fwd(params, x))

    ref = jax.block_until_ready(ref_encoder(params, x))
    assert out.shape == (batch, num_hiddens, spatial // 4, spatial // 4), out.shape
    max_err = float(jnp.max(jnp.abs(out - ref)))
    assert max_err < 5e-2, f"max abs diff too large: {max_err}"

    print("KERNEL_OK")
</pallas_src>

<mosaic_0001>
module attributes {stable_mosaic.version = 11 : i64} {
  func.func @_conv_kernel(%arg0: i32, %arg1: i32, %arg2: i32, %arg3: memref<128x128xbf16, #tpu.memory_space<vmem>>, %arg4: memref<128x128xbf16, #tpu.memory_space<vmem>>, %arg5: memref<1x128xf32, #tpu.memory_space<vmem>>, %arg6: memref<128x128xf32, #tpu.memory_space<vmem>>, %arg7: memref<128x128xf32, #tpu.memory_space<vmem>>) attributes {dimension_semantics = [#tpu.dimension_semantics<parallel>, #tpu.dimension_semantics<parallel>, #tpu.dimension_semantics<arbitrary>], iteration_bounds = array<i64: 1, 1, 1>, scalar_prefetch = 0 : i64, scratch_operands = 1 : i64, tpu.core_type = #tpu.core_type<tc>, window_params = [{transform_indices = @transform_0, window_bounds = array<i64: 128, 128>}, {transform_indices = @transform_1, window_bounds = array<i64: 128, 128>}, {transform_indices = @transform_2, window_bounds = array<i64: 1, 128>}, {transform_indices = @transform_3, window_bounds = array<i64: 128, 128>}]} {
    %c0_i32 = arith.constant 0 : i32
    %0 = arith.cmpi eq, %arg2, %c0_i32 : i32
    %1 = arith.extui %0 : i1 to i32
    %c0_i32_0 = arith.constant 0 : i32
    %2 = arith.cmpi ne, %1, %c0_i32_0 : i32
    scf.if %2 {
      %cst_10 = arith.constant 0.000000e+00 : f32
      %12 = vector.broadcast %cst_10 : f32 to vector<128x128xf32>
      %c0_11 = arith.constant 0 : index
      %c0_12 = arith.constant 0 : index
      %13 = vector.load %arg7[%c0_11, %c0_12] : memref<128x128xf32, #tpu.memory_space<vmem>>, vector<128x128xf32>
      tpu.vector_store %arg7[%c0_11, %c0_12], %12 {strides = array<i32>} : memref<128x128xf32, #tpu.memory_space<vmem>>, vector<128x128xf32>,
    } else {
    }
    %c0 = arith.constant 0 : index
    %c0_1 = arith.constant 0 : index
    %3 = vector.load %arg7[%c0, %c0_1] : memref<128x128xf32, #tpu.memory_space<vmem>>, vector<128x128xf32>
    %c0_2 = arith.constant 0 : index
    %c0_3 = arith.constant 0 : index
    %4 = vector.load %arg3[%c0_2, %c0_3] : memref<128x128xbf16, #tpu.memory_space<vmem>>, vector<128x128xbf16>
    %c0_4 = arith.constant 0 : index
    %c0_5 = arith.constant 0 : index
    %5 = vector.load %arg4[%c0_4, %c0_5] : memref<128x128xbf16, #tpu.memory_space<vmem>>, vector<128x128xbf16>
    %cst = arith.constant dense<0.000000e+00> : vector<128x128xf32>
    %6 = tpu.matmul %4, %5, %cst {dimension_numbers = #tpu.dot_dimension_numbers<[1], [0], [0], [1], [0, 0, 1, 1], [], []>} : vector<128x128xbf16>, vector<128x128xbf16>, vector<128x128xf32> -> vector<128x128xf32>
    %7 = arith.addf %3, %6 : vector<128x128xf32>
    %c0_6 = arith.constant 0 : index
    %c0_7 = arith.constant 0 : index
    %8 = vector.load %arg7[%c0_6, %c0_7] : memref<128x128xf32, #tpu.memory_space<vmem>>, vector<128x128xf32>
    tpu.vector_store %arg7[%c0_6, %c0_7], %7 {strides = array<i32>} : memref<128x128xf32, #tpu.memory_space<vmem>>, vector<128x128xf32>,
    %c0_i32_8 = arith.constant 0 : i32
    %9 = arith.cmpi eq, %arg2, %c0_i32_8 : i32
    %10 = arith.extui %9 : i1 to i32
    %c0_i32_9 = arith.constant 0 : i32
    %11 = arith.cmpi ne, %10, %c0_i32_9 : i32
    scf.if %11 {
      %c0_10 = arith.constant 0 : index
      %c0_11 = arith.constant 0 : index
      %12 = vector.load %arg7[%c0_10, %c0_11] : memref<128x128xf32, #tpu.memory_space<vmem>>, vector<128x128xf32>
      %c0_12 = arith.constant 0 : index
      %c0_13 = arith.constant 0 : index
      %13 = vector.load %arg5[%c0_12, %c0_13] : memref<1x128xf32, #tpu.memory_space<vmem>>, vector<1x128xf32>
      %14 = vector.broadcast %13 : vector<1x128xf32> to vector<128x128xf32>
      %15 = arith.addf %12, %14 : vector<128x128xf32>
      %cst_14 = arith.constant 0.000000e+00 : f32
      %16 = vector.broadcast %cst_14 : f32 to vector<128x128xf32>
      %17 = arith.maximumf %15, %16 : vector<128x128xf32>
      %c0_15 = arith.constant 0 : index
      %c0_16 = arith.constant 0 : index
      %18 = vector.load %arg6[%c0_15, %c0_16] : memref<128x128xf32, #tpu.memory_space<vmem>>, vector<128x128xf32>
      tpu.vector_store %arg6[%c0_15, %c0_16], %17 {strides = array<i32>} : memref<128x128xf32, #tpu.memory_space<vmem>>, vector<128x128xf32>,
    } else {
    }
    return
  }
  func.func @transform_0(%arg0: i32, %arg1: i32, %arg2: i32) -> (i32, i32) {
    %c0_i32 = arith.constant 0 : i32
    return %arg0, %arg2 : i32, i32
  }
  func.func @transform_1(%arg0: i32, %arg1: i32, %arg2: i32) -> (i32, i32) {
    %c0_i32 = arith.constant 0 : i32
    return %arg2, %arg1 : i32, i32
  }
  func.func @transform_2(%arg0: i32, %arg1: i32, %arg2: i32) -> (i32, i32) {
    %c0_i32 = arith.constant 0 : i32
    %c0_i32_0 = arith.constant 0 : i32
    return %c0_i32, %arg1 : i32, i32
  }
  func.func @transform_3(%arg0: i32, %arg1: i32, %arg2: i32) -> (i32, i32) {
    %c0_i32 = arith.constant 0 : i32
    return %arg0, %arg1 : i32, i32
  }
}

module attributes {stable_mosaic.version = 11 : i64} {
  func.func @_conv_kernel(%arg0: i32, %arg1: i32, %arg2: i32, %arg3: memref<32x256xbf16, #tpu.memory_space<vmem>>, %arg4: memref<256x128xbf16, #tpu.memory_space<vmem>>, %arg5: memref<1x128xf32, #tpu.memory_space<vmem>>, %arg6: memref<32x128xf32, #tpu.memory_space<vmem>>, %arg7: memref<32x128xf32, #tpu.memory_space<vmem>>) attributes {dimension_semantics = [#tpu.dimension_semantics<parallel>, #tpu.dimension_semantics<parallel>, #tpu.dimension_semantics<arbitrary>], iteration_bounds = array<i64: 1, 1, 1>, scalar_prefetch = 0 : i64, scratch_operands = 1 : i64, tpu.core_type = #tpu.core_type<tc>, window_params = [{transform_indices = @transform_0, window_bounds = array<i64: 32, 256>}, {transform_indices = @transform_1, window_bounds = array<i64: 256, 128>}, {transform_indices = @transform_2, window_bounds = array<i64: 1, 128>}, {transform_indices = @transform_3, window_bounds = array<i64: 32, 128>}]} {
    %c0_i32 = arith.constant 0 : i32
    %0 = arith.cmpi eq, %arg2, %c0_i32 : i32
    %1 = arith.extui %0 : i1 to i32
    %c0_i32_0 = arith.constant 0 : i32
    %2 = arith.cmpi ne, %1, %c0_i32_0 : i32
    scf.if %2 {
      %cst_10 = arith.constant 0.000000e+00 : f32
      %12 = vector.broadcast %cst_10 : f32 to vector<32x128xf32>
      %c0_11 = arith.constant 0 : index
      %c0_12 = arith.constant 0 : index
      %13 = vector.load %arg7[%c0_11, %c0_12] : memref<32x128xf32, #tpu.memory_space<vmem>>, vector<32x128xf32>
      tpu.vector_store %arg7[%c0_11, %c0_12], %12 {strides = array<i32>} : memref<32x128xf32, #tpu.memory_space<vmem>>, vector<32x128xf32>,
    } else {
    }
    %c0 = arith.constant 0 : index
    %c0_1 = arith.constant 0 : index
    %3 = vector.load %arg7[%c0, %c0_1] : memref<32x128xf32, #tpu.memory_space<vmem>>, vector<32x128xf32>
    %c0_2 = arith.constant 0 : index
    %c0_3 = arith.constant 0 : index
    %4 = vector.load %arg3[%c0_2, %c0_3] : memref<32x256xbf16, #tpu.memory_space<vmem>>, vector<32x256xbf16>
    %c0_4 = arith.constant 0 : index
    %c0_5 = arith.constant 0 : index
    %5 = vector.load %arg4[%c0_4, %c0_5] : memref<256x128xbf16, #tpu.memory_space<vmem>>, vector<256x128xbf16>
    %cst = arith.constant dense<0.000000e+00> : vector<32x128xf32>
    %6 = tpu.matmul %4, %5, %cst {dimension_numbers = #tpu.dot_dimension_numbers<[1], [0], [0], [1], [0, 0, 1, 1], [], []>} : vector<32x256xbf16>, vector<256x128xbf16>, vector<32x128xf32> -> vector<32x128xf32>
    %7 = arith.addf %3, %6 : vector<32x128xf32>
    %c0_6 = arith.constant 0 : index
    %c0_7 = arith.constant 0 : index
    %8 = vector.load %arg7[%c0_6, %c0_7] : memref<32x128xf32, #tpu.memory_space<vmem>>, vector<32x128xf32>
    tpu.vector_store %arg7[%c0_6, %c0_7], %7 {strides = array<i32>} : memref<32x128xf32, #tpu.memory_space<vmem>>, vector<32x128xf32>,
    %c0_i32_8 = arith.constant 0 : i32
    %9 = arith.cmpi eq, %arg2, %c0_i32_8 : i32
    %10 = arith.extui %9 : i1 to i32
    %c0_i32_9 = arith.constant 0 : i32
    %11 = arith.cmpi ne, %10, %c0_i32_9 : i32
    scf.if %11 {
      %c0_10 = arith.constant 0 : index
      %c0_11 = arith.constant 0 : index
      %12 = vector.load %arg7[%c0_10, %c0_11] : memref<32x128xf32, #tpu.memory_space<vmem>>, vector<32x128xf32>
      %c0_12 = arith.constant 0 : index
      %c0_13 = arith.constant 0 : index
      %13 = vector.load %arg5[%c0_12, %c0_13] : memref<1x128xf32, #tpu.memory_space<vmem>>, vector<1x128xf32>
      %14 = vector.broadcast %13 : vector<1x128xf32> to vector<32x128xf32>
      %15 = arith.addf %12, %14 : vector<32x128xf32>
      %cst_14 = arith.constant 0.000000e+00 : f32
      %16 = vector.broadcast %cst_14 : f32 to vector<32x128xf32>
      %17 = arith.maximumf %15, %16 : vector<32x128xf32>
      %c0_15 = arith.constant 0 : index
      %c0_16 = arith.constant 0 : index
      %18 = vector.load %arg6[%c0_15, %c0_16] : memref<32x128xf32, #tpu.memory_space<vmem>>, vector<32x128xf32>
      tpu.vector_store %arg6[%c0_15, %c0_16], %17 {strides = array<i32>} : memref<32x128xf32, #tpu.memory_space<vmem>>, vector<32x128xf32>,
    } else {
    }
    return
  }
  func.func @transform_0(%arg0: i32, %arg1: i32, %arg2: i32) -> (i32, i32) {
    %c0_i32 = arith.constant 0 : i32
    return %arg0, %arg2 : i32, i32
  }
  func.func @transform_1(%arg0: i32, %arg1: i32, %arg2: i32) -> (i32, i32) {
    %c0_i32 = arith.constant 0 : i32
    return %arg2, %arg1 : i32, i32
  }
  func.func @transform_2(%arg0: i32, %arg1: i32, %arg2: i32) -> (i32, i32) {
    %c0_i32 = arith.constant 0 : i32
    %c0_i32_0 = arith.constant 0 : i32
    return %c0_i32, %arg1 : i32, i32
  }
  func.func @transform_3(%arg0: i32, %arg1: i32, %arg2: i32) -> (i32, i32) {
    %c0_i32 = arith.constant 0 : i32
    return %arg0, %arg1 : i32, i32
  }
}

module attributes {stable_mosaic.version = 11 : i64} {
  func.func @_conv_kernel(%arg0: i32, %arg1: i32, %arg2: i32, %arg3: memref<32x384xbf16, #tpu.memory_space<vmem>>, %arg4: memref<384x128xbf16, #tpu.memory_space<vmem>>, %arg5: memref<1x128xf32, #tpu.memory_space<vmem>>, %arg6: memref<32x128xf32, #tpu.memory_space<vmem>>, %arg7: memref<32x128xf32, #tpu.memory_space<vmem>>) attributes {dimension_semantics = [#tpu.dimension_semantics<parallel>, #tpu.dimension_semantics<parallel>, #tpu.dimension_semantics<arbitrary>], iteration_bounds = array<i64: 1, 1, 1>, scalar_prefetch = 0 : i64, scratch_operands = 1 : i64, tpu.core_type = #tpu.core_type<tc>, window_params = [{transform_indices = @transform_0, window_bounds = array<i64: 32, 384>}, {transform_indices = @transform_1, window_bounds = array<i64: 384, 128>}, {transform_indices = @transform_2, window_bounds = array<i64: 1, 128>}, {transform_indices = @transform_3, window_bounds = array<i64: 32, 128>}]} {
    %c0_i32 = arith.constant 0 : i32
    %0 = arith.cmpi eq, %arg2, %c0_i32 : i32
    %1 = arith.extui %0 : i1 to i32
    %c0_i32_0 = arith.constant 0 : i32
    %2 = arith.cmpi ne, %1, %c0_i32_0 : i32
    scf.if %2 {
      %cst_10 = arith.constant 0.000000e+00 : f32
      %12 = vector.broadcast %cst_10 : f32 to vector<32x128xf32>
      %c0_11 = arith.constant 0 : index
      %c0_12 = arith.constant 0 : index
      %13 = vector.load %arg7[%c0_11, %c0_12] : memref<32x128xf32, #tpu.memory_space<vmem>>, vector<32x128xf32>
      tpu.vector_store %arg7[%c0_11, %c0_12], %12 {strides = array<i32>} : memref<32x128xf32, #tpu.memory_space<vmem>>, vector<32x128xf32>,
    } else {
    }
    %c0 = arith.constant 0 : index
    %c0_1 = arith.constant 0 : index
    %3 = vector.load %arg7[%c0, %c0_1] : memref<32x128xf32, #tpu.memory_space<vmem>>, vector<32x128xf32>
    %c0_2 = arith.constant 0 : index
    %c0_3 = arith.constant 0 : index
    %4 = vector.load %arg3[%c0_2, %c0_3] : memref<32x384xbf16, #tpu.memory_space<vmem>>, vector<32x384xbf16>
    %c0_4 = arith.constant 0 : index
    %c0_5 = arith.constant 0 : index
    %5 = vector.load %arg4[%c0_4, %c0_5] : memref<384x128xbf16, #tpu.memory_space<vmem>>, vector<384x128xbf16>
    %cst = arith.constant dense<0.000000e+00> : vector<32x128xf32>
    %6 = tpu.matmul %4, %5, %cst {dimension_numbers = #tpu.dot_dimension_numbers<[1], [0], [0], [1], [0, 0, 1, 1], [], []>} : vector<32x384xbf16>, vector<384x128xbf16>, vector<32x128xf32> -> vector<32x128xf32>
    %7 = arith.addf %3, %6 : vector<32x128xf32>
    %c0_6 = arith.constant 0 : index
    %c0_7 = arith.constant 0 : index
    %8 = vector.load %arg7[%c0_6, %c0_7] : memref<32x128xf32, #tpu.memory_space<vmem>>, vector<32x128xf32>
    tpu.vector_store %arg7[%c0_6, %c0_7], %7 {strides = array<i32>} : memref<32x128xf32, #tpu.memory_space<vmem>>, vector<32x128xf32>,
    %c0_i32_8 = arith.constant 0 : i32
    %9 = arith.cmpi eq, %arg2, %c0_i32_8 : i32
    %10 = arith.extui %9 : i1 to i32
    %c0_i32_9 = arith.constant 0 : i32
    %11 = arith.cmpi ne, %10, %c0_i32_9 : i32
    scf.if %11 {
      %c0_10 = arith.constant 0 : index
      %c0_11 = arith.constant 0 : index
      %12 = vector.load %arg7[%c0_10, %c0_11] : memref<32x128xf32, #tpu.memory_space<vmem>>, vector<32x128xf32>
      %c0_12 = arith.constant 0 : index
      %c0_13 = arith.constant 0 : index
      %13 = vector.load %arg5[%c0_12, %c0_13] : memref<1x128xf32, #tpu.memory_space<vmem>>, vector<1x128xf32>
      %14 = vector.broadcast %13 : vector<1x128xf32> to vector<32x128xf32>
      %15 = arith.addf %12, %14 : vector<32x128xf32>
      %c0_14 = arith.constant 0 : index
      %c0_15 = arith.constant 0 : index
      %16 = vector.load %arg6[%c0_14, %c0_15] : memref<32x128xf32, #tpu.memory_space<vmem>>, vector<32x128xf32>
      tpu.vector_store %arg6[%c0_14, %c0_15], %15 {strides = array<i32>} : memref<32x128xf32, #tpu.memory_space<vmem>>, vector<32x128xf32>,
    } else {
    }
    return
  }
  func.func @transform_0(%arg0: i32, %arg1: i32, %arg2: i32) -> (i32, i32) {
    %c0_i32 = arith.constant 0 : i32
    return %arg0, %arg2 : i32, i32
  }
  func.func @transform_1(%arg0: i32, %arg1: i32, %arg2: i32) -> (i32, i32) {
    %c0_i32 = arith.constant 0 : i32
    return %arg2, %arg1 : i32, i32
  }
  func.func @transform_2(%arg0: i32, %arg1: i32, %arg2: i32) -> (i32, i32) {
    %c0_i32 = arith.constant 0 : i32
    %c0_i32_0 = arith.constant 0 : i32
    return %c0_i32, %arg1 : i32, i32
  }
  func.func @transform_3(%arg0: i32, %arg1: i32, %arg2: i32) -> (i32, i32) {
    %c0_i32 = arith.constant 0 : i32
    return %arg0, %arg1 : i32, i32
  }
}

module attributes {stable_mosaic.version = 11 : i64} {
  func.func @_res_kernel(%arg0: i32, %arg1: i32, %arg2: memref<32x384xbf16, #tpu.memory_space<vmem>>, %arg3: memref<384x128xbf16, #tpu.memory_space<vmem>>, %arg4: memref<128x128xbf16, #tpu.memory_space<vmem>>, %arg5: memref<32x128xf32, #tpu.memory_space<vmem>>, %arg6: memref<32x128xf32, #tpu.memory_space<vmem>>, %arg7: memref<32x128xf32, #tpu.memory_space<vmem>>) attributes {dimension_semantics = [#tpu.dimension_semantics<parallel>, #tpu.dimension_semantics<arbitrary>], iteration_bounds = array<i64: 1, 1>, scalar_prefetch = 0 : i64, scratch_operands = 1 : i64, tpu.core_type = #tpu.core_type<tc>, window_params = [{transform_indices = @transform_0, window_bounds = array<i64: 32, 384>}, {transform_indices = @transform_1, window_bounds = array<i64: 384, 128>}, {pipeline_mode = #tpu.pipeline_mode<synchronous>, transform_indices = @transform_2, window_bounds = array<i64: 128, 128>}, {transform_indices = @transform_3, window_bounds = array<i64: 32, 128>}, {transform_indices = @transform_4, window_bounds = array<i64: 32, 128>}]} {
    %c0_i32 = arith.constant 0 : i32
    %0 = arith.cmpi eq, %arg1, %c0_i32 : i32
    %1 = arith.extui %0 : i1 to i32
    %c0_i32_0 = arith.constant 0 : i32
    %2 = arith.cmpi ne, %1, %c0_i32_0 : i32
    scf.if %2 {
      %cst_10 = arith.constant 0.000000e+00 : f32
      %12 = vector.broadcast %cst_10 : f32 to vector<32x128xf32>
      %c0_11 = arith.constant 0 : index
      %c0_12 = arith.constant 0 : index
      %13 = vector.load %arg7[%c0_11, %c0_12] : memref<32x128xf32, #tpu.memory_space<vmem>>, vector<32x128xf32>
      tpu.vector_store %arg7[%c0_11, %c0_12], %12 {strides = array<i32>} : memref<32x128xf32, #tpu.memory_space<vmem>>, vector<32x128xf32>,
    } else {
    }
    %c0 = arith.constant 0 : index
    %c0_1 = arith.constant 0 : index
    %3 = vector.load %arg7[%c0, %c0_1] : memref<32x128xf32, #tpu.memory_space<vmem>>, vector<32x128xf32>
    %c0_2 = arith.constant 0 : index
    %c0_3 = arith.constant 0 : index
    %4 = vector.load %arg2[%c0_2, %c0_3] : memref<32x384xbf16, #tpu.memory_space<vmem>>, vector<32x384xbf16>
    %c0_4 = arith.constant 0 : index
    %c0_5 = arith.constant 0 : index
    %5 = vector.load %arg3[%c0_4, %c0_5] : memref<384x128xbf16, #tpu.memory_space<vmem>>, vector<384x128xbf16>
    %cst = arith.constant dense<0.000000e+00> : vector<32x128xf32>
    %6 = tpu.matmul %4, %5, %cst {dimension_numbers = #tpu.dot_dimension_numbers<[1], [0], [0], [1], [0, 0, 1, 1], [], []>} : vector<32x384xbf16>, vector<384x128xbf16>, vector<32x128xf32> -> vector<32x128xf32>
    %7 = arith.addf %3, %6 : vector<32x128xf32>
    %c0_6 = arith.constant 0 : index
    %c0_7 = arith.constant 0 : index
    %8 = vector.load %arg7[%c0_6, %c0_7] : memref<32x128xf32, #tpu.memory_space<vmem>>, vector<32x128xf32>
    tpu.vector_store %arg7[%c0_6, %c0_7], %7 {strides = array<i32>} : memref<32x128xf32, #tpu.memory_space<vmem>>, vector<32x128xf32>,
    %c0_i32_8 = arith.constant 0 : i32
    %9 = arith.cmpi eq, %arg1, %c0_i32_8 : i32
    %10 = arith.extui %9 : i1 to i32
    %c0_i32_9 = arith.constant 0 : i32
    %11 = arith.cmpi ne, %10, %c0_i32_9 : i32
    scf.if %11 {
      %c0_10 = arith.constant 0 : index
      %c0_11 = arith.constant 0 : index
      %12 = vector.load %arg7[%c0_10, %c0_11] : memref<32x128xf32, #tpu.memory_space<vmem>>, vector<32x128xf32>
      %cst_12 = arith.constant 0.000000e+00 : f32
      %13 = vector.broadcast %cst_12 : f32 to vector<32x128xf32>
      %14 = arith.maximumf %12, %13 : vector<32x128xf32>
      %15 = arith.truncf %14 : vector<32x128xf32> to vector<32x128xbf16>
      %c0_13 = arith.constant 0 : index
      %c0_14 = arith.constant 0 : index
      %16 = vector.load %arg4[%c0_13, %c0_14] : memref<128x128xbf16, #tpu.memory_space<vmem>>, vector<128x128xbf16>
      %cst_15 = arith.constant dense<0.000000e+00> : vector<32x128xf32>
      %17 = tpu.matmul %15, %16, %cst_15 {dimension_numbers = #tpu.dot_dimension_numbers<[1], [0], [0], [1], [0, 0, 1, 1], [], []>} : vector<32x128xbf16>, vector<128x128xbf16>, vector<32x128xf32> -> vector<32x128xf32>
      %c0_16 = arith.constant 0 : index
      %c0_17 = arith.constant 0 : index
      %18 = vector.load %arg5[%c0_16, %c0_17] : memref<32x128xf32, #tpu.memory_space<vmem>>, vector<32x128xf32>
      %19 = arith.addf %17, %18 : vector<32x128xf32>
      %cst_18 = arith.constant 0.000000e+00 : f32
      %20 = vector.broadcast %cst_18 : f32 to vector<32x128xf32>
      %21 = arith.maximumf %19, %20 : vector<32x128xf32>
      %c0_19 = arith.constant 0 : index
      %c0_20 = arith.constant 0 : index
      %22 = vector.load %arg6[%c0_19, %c0_20] : memref<32x128xf32, #tpu.memory_space<vmem>>, vector<32x128xf32>
      tpu.vector_store %arg6[%c0_19, %c0_20], %21 {strides = array<i32>} : memref<32x128xf32, #tpu.memory_space<vmem>>, vector<32x128xf32>,
    } else {
    }
    return
  }
  func.func @transform_0(%arg0: i32, %arg1: i32) -> (i32, i32) {
    %c0_i32 = arith.constant 0 : i32
    return %arg0, %arg1 : i32, i32
  }
  func.func @transform_1(%arg0: i32, %arg1: i32) -> (i32, i32) {
    %c0_i32 = arith.constant 0 : i32
    %c0_i32_0 = arith.constant 0 : i32
    return %arg1, %c0_i32 : i32, i32
  }
  func.func @transform_2(%arg0: i32, %arg1: i32) -> (i32, i32) {
    %c0_i32 = arith.constant 0 : i32
    %c0_i32_0 = arith.constant 0 : i32
    %c0_i32_1 = arith.constant 0 : i32
    return %c0_i32, %c0_i32_0 : i32, i32
  }
  func.func @transform_3(%arg0: i32, %arg1: i32) -> (i32, i32) {
    %c0_i32 = arith.constant 0 : i32
    %c0_i32_0 = arith.constant 0 : i32
    return %arg0, %c0_i32 : i32, i32
  }
  func.func @transform_4(%arg0: i32, %arg1: i32) -> (i32, i32) {
    %c0_i32 = arith.constant 0 : i32
    %c0_i32_0 = arith.constant 0 : i32
    return %arg0, %c0_i32 : i32, i32
  }
}

module attributes {stable_mosaic.version = 11 : i64} {
  func.func @_res_kernel(%arg0: i32, %arg1: i32, %arg2: memref<32x384xbf16, #tpu.memory_space<vmem>>, %arg3: memref<384x128xbf16, #tpu.memory_space<vmem>>, %arg4: memref<128x128xbf16, #tpu.memory_space<vmem>>, %arg5: memref<32x128xf32, #tpu.memory_space<vmem>>, %arg6: memref<32x128xf32, #tpu.memory_space<vmem>>, %arg7: memref<32x128xf32, #tpu.memory_space<vmem>>) attributes {dimension_semantics = [#tpu.dimension_semantics<parallel>, #tpu.dimension_semantics<arbitrary>], iteration_bounds = array<i64: 1, 1>, scalar_prefetch = 0 : i64, scratch_operands = 1 : i64, tpu.core_type = #tpu.core_type<tc>, window_params = [{transform_indices = @transform_0, window_bounds = array<i64: 32, 384>}, {transform_indices = @transform_1, window_bounds = array<i64: 384, 128>}, {pipeline_mode = #tpu.pipeline_mode<synchronous>, transform_indices = @transform_2, window_bounds = array<i64: 128, 128>}, {transform_indices = @transform_3, window_bounds = array<i64: 32, 128>}, {transform_indices = @transform_4, window_bounds = array<i64: 32, 128>}]} {
    %c0_i32 = arith.constant 0 : i32
    %0 = arith.cmpi eq, %arg1, %c0_i32 : i32
    %1 = arith.extui %0 : i1 to i32
    %c0_i32_0 = arith.constant 0 : i32
    %2 = arith.cmpi ne, %1, %c0_i32_0 : i32
    scf.if %2 {
      %cst_10 = arith.constant 0.000000e+00 : f32
      %12 = vector.broadcast %cst_10 : f32 to vector<32x128xf32>
      %c0_11 = arith.constant 0 : index
      %c0_12 = arith.constant 0 : index
      %13 = vector.load %arg7[%c0_11, %c0_12] : memref<32x128xf32, #tpu.memory_space<vmem>>, vector<32x128xf32>
      tpu.vector_store %arg7[%c0_11, %c0_12], %12 {strides = array<i32>} : memref<32x128xf32, #tpu.memory_space<vmem>>, vector<32x128xf32>,
    } else {
    }
    %c0 = arith.constant 0 : index
    %c0_1 = arith.constant 0 : index
    %3 = vector.load %arg7[%c0, %c0_1] : memref<32x128xf32, #tpu.memory_space<vmem>>, vector<32x128xf32>
    %c0_2 = arith.constant 0 : index
    %c0_3 = arith.constant 0 : index
    %4 = vector.load %arg2[%c0_2, %c0_3] : memref<32x384xbf16, #tpu.memory_space<vmem>>, vector<32x384xbf16>
    %c0_4 = arith.constant 0 : index
    %c0_5 = arith.constant 0 : index
    %5 = vector.load %arg3[%c0_4, %c0_5] : memref<384x128xbf16, #tpu.memory_space<vmem>>, vector<384x128xbf16>
    %cst = arith.constant dense<0.000000e+00> : vector<32x128xf32>
    %6 = tpu.matmul %4, %5, %cst {dimension_numbers = #tpu.dot_dimension_numbers<[1], [0], [0], [1], [0, 0, 1, 1], [], []>} : vector<32x384xbf16>, vector<384x128xbf16>, vector<32x128xf32> -> vector<32x128xf32>
    %7 = arith.addf %3, %6 : vector<32x128xf32>
    %c0_6 = arith.constant 0 : index
    %c0_7 = arith.constant 0 : index
    %8 = vector.load %arg7[%c0_6, %c0_7] : memref<32x128xf32, #tpu.memory_space<vmem>>, vector<32x128xf32>
    tpu.vector_store %arg7[%c0_6, %c0_7], %7 {strides = array<i32>} : memref<32x128xf32, #tpu.memory_space<vmem>>, vector<32x128xf32>,
    %c0_i32_8 = arith.constant 0 : i32
    %9 = arith.cmpi eq, %arg1, %c0_i32_8 : i32
    %10 = arith.extui %9 : i1 to i32
    %c0_i32_9 = arith.constant 0 : i32
    %11 = arith.cmpi ne, %10, %c0_i32_9 : i32
    scf.if %11 {
      %c0_10 = arith.constant 0 : index
      %c0_11 = arith.constant 0 : index
      %12 = vector.load %arg7[%c0_10, %c0_11] : memref<32x128xf32, #tpu.memory_space<vmem>>, vector<32x128xf32>
      %cst_12 = arith.constant 0.000000e+00 : f32
      %13 = vector.broadcast %cst_12 : f32 to vector<32x128xf32>
      %14 = arith.maximumf %12, %13 : vector<32x128xf32>
      %15 = arith.truncf %14 : vector<32x128xf32> to vector<32x128xbf16>
      %c0_13 = arith.constant 0 : index
      %c0_14 = arith.constant 0 : index
      %16 = vector.load %arg4[%c0_13, %c0_14] : memref<128x128xbf16, #tpu.memory_space<vmem>>, vector<128x128xbf16>
      %cst_15 = arith.constant dense<0.000000e+00> : vector<32x128xf32>
      %17 = tpu.matmul %15, %16, %cst_15 {dimension_numbers = #tpu.dot_dimension_numbers<[1], [0], [0], [1], [0, 0, 1, 1], [], []>} : vector<32x128xbf16>, vector<128x128xbf16>, vector<32x128xf32> -> vector<32x128xf32>
      %c0_16 = arith.constant 0 : index
      %c0_17 = arith.constant 0 : index
      %18 = vector.load %arg5[%c0_16, %c0_17] : memref<32x128xf32, #tpu.memory_space<vmem>>, vector<32x128xf32>
      %19 = arith.addf %17, %18 : vector<32x128xf32>
      %c0_18 = arith.constant 0 : index
      %c0_19 = arith.constant 0 : index
      %20 = vector.load %arg6[%c0_18, %c0_19] : memref<32x128xf32, #tpu.memory_space<vmem>>, vector<32x128xf32>
      tpu.vector_store %arg6[%c0_18, %c0_19], %19 {strides = array<i32>} : memref<32x128xf32, #tpu.memory_space<vmem>>, vector<32x128xf32>,
    } else {
    }
    return
  }
  func.func @transform_0(%arg0: i32, %arg1: i32) -> (i32, i32) {
    %c0_i32 = arith.constant 0 : i32
    return %arg0, %arg1 : i32, i32
  }
  func.func @transform_1(%arg0: i32, %arg1: i32) -> (i32, i32) {
    %c0_i32 = arith.constant 0 : i32
    %c0_i32_0 = arith.constant 0 : i32
    return %arg1, %c0_i32 : i32, i32
  }
  func.func @transform_2(%arg0: i32, %arg1: i32) -> (i32, i32) {
    %c0_i32 = arith.constant 0 : i32
    %c0_i32_0 = arith.constant 0 : i32
    %c0_i32_1 = arith.constant 0 : i32
    return %c0_i32, %c0_i32_0 : i32, i32
  }
  func.func @transform_3(%arg0: i32, %arg1: i32) -> (i32, i32) {
    %c0_i32 = arith.constant 0 : i32
    %c0_i32_0 = arith.constant 0 : i32
    return %arg0, %c0_i32 : i32, i32
  }
  func.func @transform_4(%arg0: i32, %arg1: i32) -> (i32, i32) {
    %c0_i32 = arith.constant 0 : i32
    %c0_i32_0 = arith.constant 0 : i32
    return %arg0, %c0_i32 : i32, i32
  }
}

</mosaic_0001>

<bundles_post_ra>
// kernel: encoder_forward.5
= control target key start
LH: loop header
LB: loop body
LE: loop exit
PB: predicated region body
PF: predicated region fallthrough
CT: control target
= control target key end

     0   :  { %s602_s1 = inlined_call_operand.vmem [shape: bf16[128,128], index: 1, kind: input, shape index: {}]   ;;  %s603_s0 = inlined_call_operand.vmem [shape: bf16[128,128], index: 0, kind: input, shape index: {}]   ;;  %s604_s2 = inlined_call_operand.vmem [shape: f32[1,128], index: 2, kind: input, shape index: {}]   ;;  %s605_s3 = inlined_call_operand.vmem [shape: f32[128,128], index: 3, kind: output, shape index: {}]  }
   0x1   :  { %v467_v0 = vld [vmem:[%s602_s1] sm:$0xff]   ;;  %v468_v1 = vld [vmem:[%s602_s1 + $0x8] sm:$0xff]   ;;  %v469_v2 = vld [vmem:[%s602_s1 + $0x10] sm:$0xff]  }
   0x2   :  { %419 = vmatprep.subr.bf16.mxu0 %v467_v0  ;;  %451 = vmatprep.subr.bf16.mxu1 %v467_v0  ;;  %v470_v3 = vld [vmem:[%s602_s1 + $0x18] sm:$0xff]   ;;  %v475_v4 = vld [vmem:[%s603_s0] sm:$0xff]   ;;  %v472_v7 = vld [vmem:[%s602_s1 + $0x28] sm:$0xff]  }
   0x3   :  { %420 = vmatpush3.bf16.msra.mxu0 %v467_v0  ;;  %459 = vmatpush3.bf16.msra.mxu1 %v467_v0  ;;  %v476_v5 = vld [vmem:[%s603_s0 + $0x20] sm:$0xff]   ;;  %v473_v8 = vld [vmem:[%s602_s1 + $0x30] sm:$0xff]   ;;  %v474_v9 = vld [vmem:[%s602_s1 + $0x38] sm:$0xff]  }
   0x4   :  { %421 = vmatprep.subr.bf16.mxu0 %v468_v1  ;;  %452 = vmatprep.subr.bf16.mxu1 %v468_v1  ;;  %v471_v6 = vld [vmem:[%s602_s1 + $0x20] sm:$0xff]   ;;  %v477_v10 = vld [vmem:[%s603_s0 + $0x8] sm:$0xff]   ;;  %v479_v12 = vld [vmem:[%s603_s0 + $0x10] sm:$0xff]  }
   0x5   :  { %435 = vmatprep.mubr.bf16.mxu0 %v475_v4  ;;  %443 = vmatprep.mubr.bf16.mxu1 %v476_v5  ;;  %v478_v11 = vld [vmem:[%s603_s0 + $0x28] sm:$0xff]   ;;  %v480_v13 = vld [vmem:[%s603_s0 + $0x30] sm:$0xff]   ;;  %v481_v14 = vld [vmem:[%s603_s0 + $0x18] sm:$0xff]  }
   0x6   :  { %v482_v15 = vld [vmem:[%s603_s0 + $0x38] sm:$0xff]   ;;  %v402_v16 = vld [vmem:[%s604_s2] ss:$0 sm:$0xff] }
   0x7   :  { %422 = vmatpush3.bf16.msra.mxu0 %v468_v1  ;;  %460 = vmatpush3.bf16.msra.mxu1 %v468_v1 }
   0x8   :  { %423 = vmatprep.subr.bf16.mxu0 %v469_v2  ;;  %453 = vmatprep.subr.bf16.mxu1 %v469_v2 }
   0xb   :  { %424 = vmatpush3.bf16.msra.mxu0 %v469_v2  ;;  %461 = vmatpush3.bf16.msra.mxu1 %v469_v2 }
   0xc   :  { %425 = vmatprep.subr.bf16.mxu0 %v470_v3  ;;  %454 = vmatprep.subr.bf16.mxu1 %v470_v3 }
   0xf   :  { %426 = vmatpush3.bf16.msra.mxu0 %v470_v3  ;;  %462 = vmatpush3.bf16.msra.mxu1 %v470_v3 }
  0x10   :  { %427 = vmatprep.subr.bf16.mxu0 %v471_v6  ;;  %455 = vmatprep.subr.bf16.mxu1 %v471_v6 }
  0x13   :  { %428 = vmatpush3.bf16.msra.mxu0 %v471_v6  ;;  %463 = vmatpush3.bf16.msra.mxu1 %v471_v6 }
  0x14   :  { %429 = vmatprep.subr.bf16.mxu0 %v472_v7  ;;  %456 = vmatprep.subr.bf16.mxu1 %v472_v7 }
  0x17   :  { %430 = vmatpush3.bf16.msra.mxu0 %v472_v7  ;;  %464 = vmatpush3.bf16.msra.mxu1 %v472_v7 }
  0x18   :  { %431 = vmatprep.subr.bf16.mxu0 %v473_v8  ;;  %457 = vmatprep.subr.bf16.mxu1 %v473_v8 }
  0x1b   :  { %432 = vmatpush3.bf16.msra.mxu0 %v473_v8  ;;  %465 = vmatpush3.bf16.msra.mxu1 %v473_v8 }
  0x1c   :  { %433 = vmatprep.subr.bf16.mxu0 %v474_v9  ;;  %458 = vmatprep.subr.bf16.mxu1 %v474_v9 }
  0x1f   :  { %434 = vmatpush3.bf16.msra.mxu0 %v474_v9  ;;  %466 = vmatpush3.bf16.msra.mxu1 %v474_v9 }
  0x22   :  { %436 = vmatmul.mubr.bf16.vlgmr.msra.gmra.mrb[0].mxu0 %v477_v10  ;;  %444 = vmatmul.mubr.bf16.vlgmr.msra.gmra.mrb[0].mxu1 %v478_v11 }
  0x23   :  { %439 = vmatprep.mubr.bf16.mxu0 %v479_v12  ;;  %447 = vmatprep.mubr.bf16.mxu1 %v480_v13 }
  0x2a   :  { %440 = vmatmul.mubr.bf16.gmra.mrb[4].mxu0 %v481_v14  ;;  %448 = vmatmul.mubr.bf16.gmra.mrb[4].mxu1 %v482_v15 }
  0xf5   :  { %v437_v17 = vpop.f32.mrb[0].mxu0  ;;  %v445_v18 = vpop.f32.mrb[0].mxu1 }
  0xf6   :  { %v336_v19 = vadd.f32 %v437_v17, %v402_v16  ;;  %v344_v20 = vadd.f32 %v445_v18, %v402_v16  ;;  %v213_v21 = vpop.f32.mrb[1].mxu0  ;;  %v245_v22 = vpop.f32.mrb[1].mxu1 }
  0xf7   :  { %v334_v23 = vadd.f32 %v402_v16, %v213_v21  ;;  %v342_v24 = vadd.f32 %v402_v16, %v245_v22  ;;  %v438_v25 = vpop.f32.mrb[2].mxu0  ;;  %v446_v26 = vpop.f32.mrb[2].mxu1 }
  0xf8   :  { %v352_v27 = vmax.f32 %v336_v19, 0.0  ;;  %v360_v28 = vmax.f32 %v344_v20, 0.0  ;;  %v337_v29 = vadd.f32 %v438_v25, %v402_v16  ;;  %v345_v30 = vadd.f32 %v446_v26, %v402_v16  ;;  %v216_v31 = vpop.f32.mrb[3].mxu0  ;;  %v248_v32 = vpop.f32.mrb[3].mxu1 }
  0xf9   :  { %v350_v33 = vmax.f32 %v334_v23, 0.0  ;;  %v358_v34 = vmax.f32 %v342_v24, 0.0  ;;  %v335_v35 = vadd.f32 %v402_v16, %v216_v31  ;;  %v343_v36 = vadd.f32 %v402_v16, %v248_v32 }
  0xfa   :  { %368 = vst [vmem:[%s605_s3 + $0x10] sm:$0xff] %v352_v27  ;;  %376 = vst [vmem:[%s605_s3 + $0x50] sm:$0xff] %v360_v28  ;;  %v353_v37 = vmax.f32 %v337_v29, 0.0  ;;  %v361_v38 = vmax.f32 %v345_v30, 0.0 }
  0xfb   :  { %366 = vst [vmem:[%s605_s3] sm:$0xff] %v350_v33  ;;  %374 = vst [vmem:[%s605_s3 + $0x40] sm:$0xff] %v358_v34  ;;  %v351_v39 = vmax.f32 %v335_v35, 0.0  ;;  %v359_v40 = vmax.f32 %v343_v36, 0.0 }
  0xfc   :  { %369 = vst [vmem:[%s605_s3 + $0x18] sm:$0xff] %v353_v37  ;;  %377 = vst [vmem:[%s605_s3 + $0x58] sm:$0xff] %v361_v38 }
  0xfd   :  { %367 = vst [vmem:[%s605_s3 + $0x8] sm:$0xff] %v351_v39  ;;  %375 = vst [vmem:[%s605_s3 + $0x48] sm:$0xff] %v359_v40  ;;  %v441_v41 = vpop.f32.mrb[4].mxu0  ;;  %v449_v42 = vpop.f32.mrb[4].mxu1 }
  0xfe   :  { %v340_v43 = vadd.f32 %v441_v41, %v402_v16  ;;  %v348_v44 = vadd.f32 %v449_v42, %v402_v16  ;;  %v229_v45 = vpop.f32.mrb[5].mxu0  ;;  %v261_v46 = vpop.f32.mrb[5].mxu1 }
  0xff   :  { %v338_v47 = vadd.f32 %v402_v16, %v229_v45  ;;  %v346_v48 = vadd.f32 %v402_v16, %v261_v46  ;;  %v442_v49 = vpop.f32.mrb[6].mxu0  ;;  %v450_v50 = vpop.f32.mrb[6].mxu1 }
 0x100   :  { %v356_v51 = vmax.f32 %v340_v43, 0.0  ;;  %v364_v52 = vmax.f32 %v348_v44, 0.0  ;;  %v341_v53 = vadd.f32 %v442_v49, %v402_v16  ;;  %v349_v54 = vadd.f32 %v450_v50, %v402_v16  ;;  %v232_v55 = vpop.f32.mrb[7].mxu0  ;;  %v264_v56 = vpop.f32.mrb[7].mxu1 }
 0x101   :  { %v354_v57 = vmax.f32 %v338_v47, 0.0  ;;  %v362_v58 = vmax.f32 %v346_v48, 0.0  ;;  %v339_v59 = vadd.f32 %v402_v16, %v232_v55  ;;  %v347_v60 = vadd.f32 %v402_v16, %v264_v56 }
 0x102   :  { %372 = vst [vmem:[%s605_s3 + $0x30] sm:$0xff] %v356_v51  ;;  %380 = vst [vmem:[%s605_s3 + $0x70] sm:$0xff] %v364_v52  ;;  %v357_v61 = vmax.f32 %v341_v53, 0.0  ;;  %v365_v62 = vmax.f32 %v349_v54, 0.0 }
 0x103   :  { %370 = vst [vmem:[%s605_s3 + $0x20] sm:$0xff] %v354_v57  ;;  %378 = vst [vmem:[%s605_s3 + $0x60] sm:$0xff] %v362_v58  ;;  %v355_v63 = vmax.f32 %v339_v59, 0.0  ;;  %v363_v0 = vmax.f32 %v347_v60, 0.0 }
 0x104   :  { %373 = vst [vmem:[%s605_s3 + $0x38] sm:$0xff] %v357_v61  ;;  %381 = vst [vmem:[%s605_s3 + $0x78] sm:$0xff] %v365_v62 }
 0x105   :  { %371 = vst [vmem:[%s605_s3 + $0x28] sm:$0xff] %v355_v63  ;;  %379 = vst [vmem:[%s605_s3 + $0x68] sm:$0xff] %v363_v0 }

// kernel: encoder_forward.6
= control target key start
LH: loop header
LB: loop body
LE: loop exit
PB: predicated region body
PF: predicated region fallthrough
CT: control target
= control target key end

     0   :  { %s448_s1 = inlined_call_operand.vmem [shape: bf16[256,128], index: 1, kind: input, shape index: {}]   ;;  %s449_s0 = inlined_call_operand.vmem [shape: bf16[32,256], index: 0, kind: input, shape index: {}]   ;;  %s450_s2 = inlined_call_operand.vmem [shape: f32[1,128], index: 2, kind: input, shape index: {}]   ;;  %s451_s3 = inlined_call_operand.vmem [shape: f32[32,128], index: 3, kind: output, shape index: {}]  }
   0x1   :  { %v331_v0 = vld [vmem:[%s448_s1 + $0x40] sm:$0xff]   ;;  %v333_v2 = vld [vmem:[%s448_s1 + $0x48] sm:$0xff]   ;;  %v335_v4 = vld [vmem:[%s448_s1 + $0x50] sm:$0xff]  }
   0x2   :  { %v332_v1 = vld [vmem:[%s448_s1] sm:$0xff]   ;;  %287 = vmatprep.subr.bf16.mxu0 %v331_v0  ;;  %315 = vmatprep.subr.bf16.mxu1 %v331_v0  ;;  %v334_v3 = vld [vmem:[%s448_s1 + $0x8] sm:$0xff]   ;;  %v336_v5 = vld [vmem:[%s448_s1 + $0x10] sm:$0xff]  }
   0x3   :  { %288 = vmatpush3.bf16.msra.mxu0 %v332_v1  ;;  %323 = vmatpush3.bf16.msra.mxu1 %v332_v1  ;;  %v337_v6 = vld [vmem:[%s448_s1 + $0x58] sm:$0xff]   ;;  %v339_v8 = vld [vmem:[%s448_s1 + $0x60] sm:$0xff]   ;;  %v341_v10 = vld [vmem:[%s448_s1 + $0x68] sm:$0xff]  }
   0x4   :  { %289 = vmatprep.subr.bf16.mxu0 %v333_v2  ;;  %316 = vmatprep.subr.bf16.mxu1 %v333_v2  ;;  %v338_v7 = vld [vmem:[%s448_s1 + $0x18] sm:$0xff]   ;;  %v340_v9 = vld [vmem:[%s448_s1 + $0x20] sm:$0xff]   ;;  %v342_v13 = vld [vmem:[%s448_s1 + $0x28] sm:$0xff]  }
   0x5   :  { %v349_v11 = vld [vmem:[%s449_s0 + $0x4] ss:$8 sps:$4 sm:$0xff]   ;;  %v352_v12 = vld [vmem:[%s449_s0 + $0x14] ss:$8 sps:$4 sm:$0xff]   ;;  %v347_v18 = vld [vmem:[%s449_s0] ss:$8 sps:$4 sm:$0xff]  }
   0x6   :  { %v343_v14 = vld [vmem:[%s448_s1 + $0x70] sm:$0xff]   ;;  %211 = vmatprep.mubr.bf16.mxu0 %v349_v11  ;;  %219 = vmatprep.mubr.bf16.mxu1 %v352_v12  ;;  %v345_v16 = vld [vmem:[%s448_s1 + $0x78] sm:$0xff]   ;;  %v286_v23 = vld [vmem:[%s450_s2] ss:$0 sm:$0xff] }
   0x7   :  { %290 = vmatpush3.bf16.msra.mxu0 %v334_v3  ;;  %324 = vmatpush3.bf16.msra.mxu1 %v334_v3  ;;  %v344_v15 = vld [vmem:[%s448_s1 + $0x30] sm:$0xff]   ;;  %v346_v17 = vld [vmem:[%s448_s1 + $0x38] sm:$0xff]  }
   0x8   :  { %291 = vmatprep.subr.bf16.mxu0 %v335_v4  ;;  %317 = vmatprep.subr.bf16.mxu1 %v335_v4  ;;  %v350_v19 = vld [vmem:[%s449_s0 + $0x10] ss:$8 sps:$4 sm:$0xff]  }
   0xb   :  { %292 = vmatpush3.bf16.msra.mxu0 %v336_v5  ;;  %325 = vmatpush3.bf16.msra.mxu1 %v336_v5 }
   0xc   :  { %293 = vmatprep.subr.bf16.mxu0 %v337_v6  ;;  %318 = vmatprep.subr.bf16.mxu1 %v337_v6 }
   0xf   :  { %294 = vmatpush3.bf16.msra.mxu0 %v338_v7  ;;  %326 = vmatpush3.bf16.msra.mxu1 %v338_v7 }
  0x10   :  { %295 = vmatprep.subr.bf16.mxu0 %v339_v8  ;;  %319 = vmatprep.subr.bf16.mxu1 %v339_v8 }
  0x13   :  { %296 = vmatpush3.bf16.msra.mxu0 %v340_v9  ;;  %327 = vmatpush3.bf16.msra.mxu1 %v340_v9 }
  0x14   :  { %297 = vmatprep.subr.bf16.mxu0 %v341_v10  ;;  %320 = vmatprep.subr.bf16.mxu1 %v341_v10 }
  0x17   :  { %298 = vmatpush3.bf16.msra.mxu0 %v342_v13  ;;  %328 = vmatpush3.bf16.msra.mxu1 %v342_v13 }
  0x18   :  { %299 = vmatprep.subr.bf16.mxu0 %v343_v14  ;;  %321 = vmatprep.subr.bf16.mxu1 %v343_v14 }
  0x1b   :  { %300 = vmatpush3.bf16.msra.mxu0 %v344_v15  ;;  %329 = vmatpush3.bf16.msra.mxu1 %v344_v15 }
  0x1c   :  { %301 = vmatprep.subr.bf16.mxu0 %v345_v16  ;;  %322 = vmatprep.subr.bf16.mxu1 %v345_v16 }
  0x1f   :  { %302 = vmatpush3.bf16.msra.mxu0 %v346_v17  ;;  %330 = vmatpush3.bf16.msra.mxu1 %v346_v17 }
  0x22   :  { %212 = vmatmul.mubr.bf16.vlgmr.msra.gmra.mrb[0].mxu0 %v347_v18  ;;  %220 = vmatmul.mubr.bf16.vlgmr.msra.gmra.mrb[0].mxu1 %v350_v19 }
  0xf5   :  { %v303_v20 = vpop.f32.mrb[0].mxu0  ;;  %v309_v21 = vpop.f32.mrb[0].mxu1 }
  0xf6   :  { %v304_v22 = vpop.f32.mrb[1].mxu0  ;;  %v310_v24 = vpop.f32.mrb[1].mxu1 }
  0xf7   :  { %v305_v25 = vadd.f32 %v304_v22, %v303_v20  ;;  %v311_v26 = vadd.f32 %v310_v24, %v309_v21  ;;  %v306_v27 = vpop.f32.mrb[2].mxu0  ;;  %v312_v28 = vpop.f32.mrb[2].mxu1 }
  0xf8   :  { %v307_v29 = vpop.f32.mrb[3].mxu0  ;;  %v313_v30 = vpop.f32.mrb[3].mxu1 }
  0xf9   :  { %v250_v31 = vadd.f32 %v305_v25, %v286_v23  ;;  %v252_v32 = vadd.f32 %v311_v26, %v286_v23  ;;  %v308_v33 = vadd.f32 %v307_v29, %v306_v27  ;;  %v314_v34 = vadd.f32 %v313_v30, %v312_v28 }
  0xfb   :  { %v254_v35 = vmax.f32 %v250_v31, 0.0  ;;  %v256_v36 = vmax.f32 %v252_v32, 0.0  ;;  %v251_v37 = vadd.f32 %v308_v33, %v286_v23  ;;  %v253_v38 = vadd.f32 %v314_v34, %v286_v23 }
  0xfd   :  { %258 = vst [vmem:[%s451_s3] sm:$0xff] %v254_v35  ;;  %260 = vst [vmem:[%s451_s3 + $0x10] sm:$0xff] %v256_v36  ;;  %v255_v39 = vmax.f32 %v251_v37, 0.0  ;;  %v257_v40 = vmax.f32 %v253_v38, 0.0 }
  0xff   :  { %259 = vst [vmem:[%s451_s3 + $0x8] sm:$0xff] %v255_v39  ;;  %261 = vst [vmem:[%s451_s3 + $0x18] sm:$0xff] %v257_v40 }

// kernel: encoder_forward.7
= control target key start
LH: loop header
LB: loop body
LE: loop exit
PB: predicated region body
PF: predicated region fallthrough
CT: control target
= control target key end

     0   :  { %s637_s1 = inlined_call_operand.vmem [shape: bf16[384,128], index: 1, kind: input, shape index: {}]   ;;  %s638_s0 = inlined_call_operand.vmem [shape: bf16[32,384], index: 0, kind: input, shape index: {}]   ;;  %s639_s2 = inlined_call_operand.vmem [shape: f32[1,128], index: 2, kind: input, shape index: {}]   ;;  %s640_s3 = inlined_call_operand.vmem [shape: f32[32,128], index: 3, kind: output, shape index: {}]  }
   0x1   :  { %v480_v0 = vld [vmem:[%s637_s1 + $0x40] sm:$0xff]   ;;  %v483_v3 = vld [vmem:[%s637_s1 + $0x48] sm:$0xff]   ;;  %v486_v6 = vld [vmem:[%s637_s1 + $0x50] sm:$0xff]  }
   0x2   :  { %v481_v1 = vld [vmem:[%s637_s1] sm:$0xff]   ;;  %422 = vmatprep.subr.bf16.mxu0 %v480_v0  ;;  %v484_v4 = vld [vmem:[%s637_s1 + $0x8] sm:$0xff]   ;;  %v487_v7 = vld [vmem:[%s637_s1 + $0x10] sm:$0xff]  }
   0x3   :  { %v482_v2 = vld [vmem:[%s637_s1 + $0x80] sm:$0xff]   ;;  %423 = vmatpush3.bf16.msra.mxu0 %v481_v1  ;;  %v485_v5 = vld [vmem:[%s637_s1 + $0x88] sm:$0xff]   ;;  %v488_v8 = vld [vmem:[%s637_s1 + $0x90] sm:$0xff]  }
   0x4   :  { %460 = vmatprep.subr.bf16.mxu1 %v482_v2  ;;  %424 = vmatprep.subr.bf16.mxu0 %v483_v3  ;;  %v489_v9 = vld [vmem:[%s637_s1 + $0x58] sm:$0xff]   ;;  %v492_v12 = vld [vmem:[%s637_s1 + $0x60] sm:$0xff]   ;;  %v495_v15 = vld [vmem:[%s637_s1 + $0x68] sm:$0xff]  }
   0x5   :  { %461 = vmatpush3.bf16.msra.mxu1 %v482_v2  ;;  %v490_v10 = vld [vmem:[%s637_s1 + $0x18] sm:$0xff]   ;;  %v494_v13 = vld [vmem:[%s637_s1 + $0xa0] sm:$0xff]   ;;  %v497_v16 = vld [vmem:[%s637_s1 + $0xa8] sm:$0xff]  }
   0x6   :  { %462 = vmatprep.subr.bf16.mxu1 %v485_v5  ;;  %v491_v11 = vld [vmem:[%s637_s1 + $0x98] sm:$0xff]   ;;  %v493_v14 = vld [vmem:[%s637_s1 + $0x20] sm:$0xff]   ;;  %v496_v17 = vld [vmem:[%s637_s1 + $0x28] sm:$0xff]  }
   0x7   :  { %425 = vmatpush3.bf16.msra.mxu0 %v484_v4  ;;  %v498_v18 = vld [vmem:[%s637_s1 + $0x70] sm:$0xff]   ;;  %v501_v21 = vld [vmem:[%s637_s1 + $0x78] sm:$0xff]   ;;  %v504_v26 = vld [vmem:[%s638_s0] ss:$12 sps:$4 sm:$0xff]  }
   0x8   :  { %426 = vmatprep.subr.bf16.mxu0 %v486_v6  ;;  %v499_v19 = vld [vmem:[%s637_s1 + $0x30] sm:$0xff]   ;;  %v503_v22 = vld [vmem:[%s637_s1 + $0xb8] sm:$0xff]   ;;  %v508_v28 = vld [vmem:[%s638_s0 + $0x20] ss:$12 sps:$4 sm:$0xff]  }
   0x9   :  { %463 = vmatpush3.bf16.msra.mxu1 %v485_v5  ;;  %v500_v20 = vld [vmem:[%s637_s1 + $0xb0] sm:$0xff]   ;;  %v502_v25 = vld [vmem:[%s637_s1 + $0x38] sm:$0xff]   ;;  %v421_v37 = vld [vmem:[%s639_s2] ss:$0 sm:$0xff] }
   0xa   :  { %464 = vmatprep.subr.bf16.mxu1 %v488_v8  ;;  %v506_v23 = vld [vmem:[%s638_s0 + $0x4] ss:$12 sps:$4 sm:$0xff]   ;;  %v507_v24 = vld [vmem:[%s638_s0 + $0x8] ss:$12 sps:$4 sm:$0xff]  }
   0xb   :  { %427 = vmatpush3.bf16.msra.mxu0 %v487_v7  ;;  %291 = vmatprep.mubr.bf16.mxu0 %v506_v23  ;;  %v509_v27 = vld [vmem:[%s638_s0 + $0x1c] ss:$12 sps:$4 sm:$0xff]   ;;  %v511_v29 = vld [vmem:[%s638_s0 + $0x18] ss:$12 sps:$4 sm:$0xff]  }
   0xc   :  { %428 = vmatprep.subr.bf16.mxu0 %v489_v9  ;;  %476 = vmatprep.mubr.bf16.mxu1 %v507_v24 }
   0xd   :  { %465 = vmatpush3.bf16.msra.mxu1 %v488_v8 }
   0xe   :  { %466 = vmatprep.subr.bf16.mxu1 %v491_v11 }
   0xf   :  { %429 = vmatpush3.bf16.msra.mxu0 %v490_v10 }
  0x10   :  { %430 = vmatprep.subr.bf16.mxu0 %v492_v12 }
  0x11   :  { %467 = vmatpush3.bf16.msra.mxu1 %v491_v11 }
  0x12   :  { %468 = vmatprep.subr.bf16.mxu1 %v494_v13 }
  0x13   :  { %431 = vmatpush3.bf16.msra.mxu0 %v493_v14 }
  0x14   :  { %432 = vmatprep.subr.bf16.mxu0 %v495_v15 }
  0x15   :  { %469 = vmatpush3.bf16.msra.mxu1 %v494_v13 }
  0x16   :  { %470 = vmatprep.subr.bf16.mxu1 %v497_v16 }
  0x17   :  { %433 = vmatpush3.bf16.msra.mxu0 %v496_v17 }
  0x18   :  { %434 = vmatprep.subr.bf16.mxu0 %v498_v18 }
  0x19   :  { %471 = vmatpush3.bf16.msra.mxu1 %v497_v16 }
  0x1a   :  { %472 = vmatprep.subr.bf16.mxu1 %v500_v20 }
  0x1b   :  { %435 = vmatpush3.bf16.msra.mxu0 %v499_v19 }
  0x1c   :  { %436 = vmatprep.subr.bf16.mxu0 %v501_v21 }
  0x1d   :  { %473 = vmatpush3.bf16.msra.mxu1 %v500_v20 }
  0x1e   :  { %474 = vmatprep.subr.bf16.mxu1 %v503_v22 }
  0x1f   :  { %437 = vmatpush3.bf16.msra.mxu0 %v502_v25 }
  0x21   :  { %475 = vmatpush3.bf16.msra.mxu1 %v503_v22 }
  0x22   :  { %292 = vmatmul.mubr.bf16.vlgmr.msra.gmra.mrb[0].mxu0 %v504_v26 }
  0x23   :  { %299 = vmatprep.mubr.bf16.mxu0 %v509_v27 }
  0x24   :  { %477 = vmatmul.mubr.bf16.vlgmr.msra.gmra.mrb[0].mxu1 %v508_v28 }
  0x2a   :  { %300 = vmatmul.mubr.bf16.gmra.mrb[4].mxu0 %v511_v29 }
  0xf5   :  { %v438_v30 = vpop.f32.mrb[0].mxu0 }
  0xf6   :  { %v439_v31 = vpop.f32.mrb[1].mxu0 }
  0xf7   :  { %v440_v32 = vadd.f32 %v439_v31, %v438_v30  ;;  %v441_v33 = vpop.f32.mrb[2].mxu0  ;;  %v478_v34 = vpop.f32.mrb[0].mxu1 }
  0xf8   :  { %v442_v35 = vpop.f32.mrb[3].mxu0  ;;  %v342_v36 = vpop.f32.mrb[1].mxu1 }
  0xf9   :  { %v443_v38 = vadd.f32 %v442_v35, %v441_v33  ;;  %v343_v39 = vadd.f32 %v440_v32, %v342_v36  ;;  %v479_v40 = vpop.f32.mrb[2].mxu1 }
  0xfa   :  { %v345_v41 = vpop.f32.mrb[3].mxu1 }
  0xfb   :  { %v379_v42 = vadd.f32 %v421_v37, %v343_v39  ;;  %v346_v43 = vadd.f32 %v443_v38, %v345_v41 }
  0xfd   :  { %383 = vst [vmem:[%s640_s3] sm:$0xff] %v379_v42  ;;  %v380_v44 = vadd.f32 %v421_v37, %v346_v43  ;;  %v444_v45 = vpop.f32.mrb[4].mxu0 }
  0xfe   :  { %v445_v46 = vpop.f32.mrb[5].mxu0 }
  0xff   :  { %384 = vst [vmem:[%s640_s3 + $0x8] sm:$0xff] %v380_v44  ;;  %v446_v47 = vadd.f32 %v445_v46, %v444_v45  ;;  %v447_v48 = vpop.f32.mrb[6].mxu0 }
 0x100   :  { %v448_v49 = vpop.f32.mrb[7].mxu0 }
 0x101   :  { %v351_v50 = vadd.f32 %v478_v34, %v446_v47  ;;  %v449_v51 = vadd.f32 %v448_v49, %v447_v48 }
 0x103   :  { %v381_v52 = vadd.f32 %v421_v37, %v351_v50  ;;  %v354_v53 = vadd.f32 %v479_v40, %v449_v51 }
 0x105   :  { %385 = vst [vmem:[%s640_s3 + $0x10] sm:$0xff] %v381_v52  ;;  %v382_v54 = vadd.f32 %v421_v37, %v354_v53 }
 0x107   :  { %386 = vst [vmem:[%s640_s3 + $0x18] sm:$0xff] %v382_v54 }

// kernel: encoder_forward.9
= control target key start
LH: loop header
LB: loop body
LE: loop exit
PB: predicated region body
PF: predicated region fallthrough
CT: control target
= control target key end

     0   :  { %s882_s0 = inlined_call_operand.vmem [shape: bf16[32,384], index: 0, kind: input, shape index: {}]   ;;  %s883_s1 = inlined_call_operand.vmem [shape: bf16[384,128], index: 1, kind: input, shape index: {}]   ;;  %s884_s2 = inlined_call_operand.vmem [shape: bf16[128,128], index: 2, kind: input, shape index: {}]   ;;  %s885_s3 = inlined_call_operand.vmem [shape: f32[32,128], index: 3, kind: input, shape index: {}]   ;;  %s886_s4 = inlined_call_operand.hbm [shape: f32[32,128], index: 4, kind: output, shape index: {}]  }
   0x1   :  { %v652_v0 = vld [vmem:[%s883_s1 + $0x40] sm:$0xff]   ;;  %v655_v3 = vld [vmem:[%s883_s1 + $0x48] sm:$0xff]   ;;  %v658_v6 = vld [vmem:[%s883_s1 + $0x50] sm:$0xff]  }
   0x2   :  { %v653_v1 = vld [vmem:[%s883_s1] sm:$0xff]   ;;  %561 = vmatprep.subr.bf16.mxu0 %v652_v0  ;;  %v656_v4 = vld [vmem:[%s883_s1 + $0x8] sm:$0xff]   ;;  %v659_v7 = vld [vmem:[%s883_s1 + $0x10] sm:$0xff]  }
   0x3   :  { %v654_v2 = vld [vmem:[%s883_s1 + $0x80] sm:$0xff]   ;;  %562 = vmatpush3.bf16.msra.mxu0 %v653_v1  ;;  %v657_v5 = vld [vmem:[%s883_s1 + $0x88] sm:$0xff]   ;;  %v660_v8 = vld [vmem:[%s883_s1 + $0x90] sm:$0xff]  }
   0x4   :  { %609 = vmatprep.subr.bf16.mxu1 %v654_v2  ;;  %563 = vmatprep.subr.bf16.mxu0 %v655_v3  ;;  %v661_v9 = vld [vmem:[%s883_s1 + $0x58] sm:$0xff]   ;;  %v664_v12 = vld [vmem:[%s883_s1 + $0x60] sm:$0xff]   ;;  %v667_v15 = vld [vmem:[%s883_s1 + $0x68] sm:$0xff]  }
   0x5   :  { %610 = vmatpush3.bf16.msra.mxu1 %v654_v2  ;;  %v662_v10 = vld [vmem:[%s883_s1 + $0x18] sm:$0xff]   ;;  %v666_v13 = vld [vmem:[%s883_s1 + $0xa0] sm:$0xff]   ;;  %v669_v16 = vld [vmem:[%s883_s1 + $0xa8] sm:$0xff]  }
   0x6   :  { %611 = vmatprep.subr.bf16.mxu1 %v657_v5  ;;  %v663_v11 = vld [vmem:[%s883_s1 + $0x98] sm:$0xff]   ;;  %v665_v14 = vld [vmem:[%s883_s1 + $0x20] sm:$0xff]   ;;  %v668_v17 = vld [vmem:[%s883_s1 + $0x28] sm:$0xff]  }
   0x7   :  { %564 = vmatpush3.bf16.msra.mxu0 %v656_v4  ;;  %v670_v18 = vld [vmem:[%s883_s1 + $0x70] sm:$0xff]   ;;  %v673_v21 = vld [vmem:[%s883_s1 + $0x78] sm:$0xff]   ;;  %v676_v26 = vld [vmem:[%s882_s0] ss:$12 sps:$4 sm:$0xff]  }
   0x8   :  { %565 = vmatprep.subr.bf16.mxu0 %v658_v6  ;;  %v671_v19 = vld [vmem:[%s883_s1 + $0x30] sm:$0xff]   ;;  %v675_v22 = vld [vmem:[%s883_s1 + $0xb8] sm:$0xff]   ;;  %v684_v27 = vld [vmem:[%s884_s2] sm:$0xff]  }
   0x9   :  { %612 = vmatpush3.bf16.msra.mxu1 %v657_v5  ;;  %v672_v20 = vld [vmem:[%s883_s1 + $0xb0] sm:$0xff]   ;;  %v674_v25 = vld [vmem:[%s883_s1 + $0x38] sm:$0xff]   ;;  %v680_v28 = vld [vmem:[%s882_s0 + $0x20] ss:$12 sps:$4 sm:$0xff]  }
   0xa   :  { %613 = vmatprep.subr.bf16.mxu1 %v660_v8  ;;  %v678_v23 = vld [vmem:[%s882_s0 + $0x4] ss:$12 sps:$4 sm:$0xff]   ;;  %v679_v24 = vld [vmem:[%s882_s0 + $0x8] ss:$12 sps:$4 sm:$0xff]  }
   0xb   :  { %566 = vmatpush3.bf16.msra.mxu0 %v659_v7  ;;  %295 = vmatprep.mubr.bf16.mxu0 %v678_v23  ;;  %v681_v29 = vld [vmem:[%s882_s0 + $0x1c] ss:$12 sps:$4 sm:$0xff]  }
   0xc   :  { %567 = vmatprep.subr.bf16.mxu0 %v661_v9  ;;  %625 = vmatprep.mubr.bf16.mxu1 %v679_v24  ;;  %v685_v30 = vld [vmem:[%s884_s2 + $0x8] sm:$0xff]  }
   0xd   :  { %614 = vmatpush3.bf16.msra.mxu1 %v660_v8 }
   0xe   :  { %615 = vmatprep.subr.bf16.mxu1 %v663_v11 }
   0xf   :  { %568 = vmatpush3.bf16.msra.mxu0 %v662_v10 }
  0x10   :  { %569 = vmatprep.subr.bf16.mxu0 %v664_v12 }
  0x11   :  { %616 = vmatpush3.bf16.msra.mxu1 %v663_v11 }
  0x12   :  { %617 = vmatprep.subr.bf16.mxu1 %v666_v13 }
  0x13   :  { %570 = vmatpush3.bf16.msra.mxu0 %v665_v14 }
  0x14   :  { %571 = vmatprep.subr.bf16.mxu0 %v667_v15 }
  0x15   :  { %618 = vmatpush3.bf16.msra.mxu1 %v666_v13 }
  0x16   :  { %619 = vmatprep.subr.bf16.mxu1 %v669_v16 }
  0x17   :  { %572 = vmatpush3.bf16.msra.mxu0 %v668_v17 }
  0x18   :  { %573 = vmatprep.subr.bf16.mxu0 %v670_v18 }
  0x19   :  { %620 = vmatpush3.bf16.msra.mxu1 %v669_v16 }
  0x1a   :  { %621 = vmatprep.subr.bf16.mxu1 %v672_v20 }
  0x1b   :  { %574 = vmatpush3.bf16.msra.mxu0 %v671_v19 }
  0x1c   :  { %575 = vmatprep.subr.bf16.mxu0 %v673_v21 }
  0x1d   :  { %622 = vmatpush3.bf16.msra.mxu1 %v672_v20 }
  0x1e   :  { %623 = vmatprep.subr.bf16.mxu1 %v675_v22 }
  0x1f   :  { %576 = vmatpush3.bf16.msra.mxu0 %v674_v25 }
  0x20   :  { %629 = vmatprep.subr.bf16.mxu0 %v684_v27 }
  0x21   :  { %624 = vmatpush3.bf16.msra.mxu1 %v675_v22 }
  0x22   :  { %296 = vmatmul.mubr.bf16.vlgmr.msra.gmra.mrb[0].mxu0 %v676_v26 }
  0x23   :  { %303 = vmatprep.mubr.bf16.mxu0 %v681_v29  ;;  %630 = vmatpush3.bf16.msra.mxu0 %v684_v27 }
  0x24   :  { %9 = vsyncpa [#allocation4], 0  ;;  %626 = vmatmul.mubr.bf16.vlgmr.msra.gmra.mrb[0].mxu1 %v680_v28  ;;  %631 = vmatprep.subr.bf16.mxu0 %v685_v30  ;;  %v686_v31 = vld [vmem:[%s884_s2 + $0x10] sm:$0xff]   ;;  %v683_v32 = vld [vmem:[%s882_s0 + $0x18] ss:$12 sps:$4 sm:$0xff]   ;;  %s716_s18 = smov [#allocation3]  }
  0x25   :  { %v687_v33 = vld [vmem:[%s884_s2 + $0x18] sm:$0xff]   ;;  %v688_v34 = vld [vmem:[%s884_s2 + $0x20] sm:$0xff]   ;;  %v689_v35 = vld [vmem:[%s884_s2 + $0x28] sm:$0xff]   ;;  %s512_s19 = sshll.u32 %s716_s18, 4  ;;  %s513_s19 = int_to_ptr.vmem [resolvable:$true] %s512_s19 }
  0x26   :  { %v690_v36 = vld [vmem:[%s884_s2 + $0x30] sm:$0xff]   ;;  %v691_v37 = vld [vmem:[%s884_s2 + $0x38] sm:$0xff]   ;;  %v398_v1 = vld [vmem:[%s885_s3] sm:$0xff]  ;;  %s692_s20 = scalar_lea.vmem %s513_s19, 512  ;;  %p697_p1 = scmp.lt.s32.totalorder %s513_s19, %s513_s19 }
  0x27   :  { %632 = vmatpush3.bf16.msra.mxu0 %v685_v30  ;;  %v400_v0 = vld [vmem:[%s885_s3 + $0x10] sm:$0xff]  ;;  %v401_v3 = vld [vmem:[%s885_s3 + $0x18] sm:$0xff]  ;;  %v399_v6 = vld [vmem:[%s885_s3 + $0x8] sm:$0xff]  ;;  %p693_p0 = scmp.ne.s32.totalorder %s513_s19, %s692_s20  ;;  %p698_p2 = scmp.lt.s32.totalorder %s692_s20, %s692_s20 }
  0x28   :  { %633 = vmatprep.subr.bf16.mxu0 %v686_v31 }
  0x29   :  { %p699_p3 = por %p698_p2, %p697_p1 }
  0x2a   :  { %304 = vmatmul.mubr.bf16.gmra.mrb[4].mxu0 %v683_v32 }
  0x2b   :  { %634 = vmatpush3.bf16.msra.mxu0 %v686_v31  ;;  %p700_p4 = pnand %p699_p3, %p693_p0 }
  0x2c   :  { %635 = vmatprep.subr.bf16.mxu0 %v687_v33 }
  0x2f   :  { %636 = vmatpush3.bf16.msra.mxu0 %v687_v33 }
  0x30   :  { %637 = vmatprep.subr.bf16.mxu0 %v688_v34 }
  0x33   :  { %638 = vmatpush3.bf16.msra.mxu0 %v688_v34 }
  0x34   :  { %639 = vmatprep.subr.bf16.mxu0 %v689_v35 }
  0x37   :  { %640 = vmatpush3.bf16.msra.mxu0 %v689_v35 }
  0x38   :  { %641 = vmatprep.subr.bf16.mxu0 %v690_v36 }
  0x3b   :  { %642 = vmatpush3.bf16.msra.mxu0 %v690_v36 }
  0x3c   :  { %643 = vmatprep.subr.bf16.mxu0 %v691_v37 }
  0x3f   :  { %644 = vmatpush3.bf16.msra.mxu0 %v691_v37 }
  0xf5   :  { %v577_v38 = vpop.f32.mrb[0].mxu0 }
  0xf6   :  { %v578_v39 = vpop.f32.mrb[1].mxu0 }
  0xf7   :  { %v579_v40 = vadd.f32 %v578_v39, %v577_v38  ;;  %v580_v41 = vpop.f32.mrb[2].mxu0  ;;  %v627_v42 = vpop.f32.mrb[0].mxu1 }
  0xf8   :  { %v581_v43 = vpop.f32.mrb[3].mxu0  ;;  %v346_v44 = vpop.f32.mrb[1].mxu1 }
  0xf9   :  { %v582_v45 = vadd.f32 %v581_v43, %v580_v41  ;;  %v347_v46 = vadd.f32 %v579_v40, %v346_v44  ;;  %v628_v47 = vpop.f32.mrb[2].mxu1 }
  0xfa   :  { %v349_v48 = vpop.f32.mrb[3].mxu1 }
  0xfb   :  { %v350_v49 = vadd.f32 %v582_v45, %v349_v48  ;;  %v376_v50 = vmax.f32 %v347_v46, 0.0 }
  0xfd   :  { %v377_v51 = vmax.f32 %v350_v49, 0.0  ;;  %v583_v52 = vpop.f32.mrb[4].mxu0 }
  0xfe   :  { %v584_v53 = vpop.f32.mrb[5].mxu0 }
  0xff   :  { %v380_v54 = vpack.c.bf16 %v377_v51, %v376_v50  ;;  %v585_v55 = vadd.f32 %v584_v53, %v583_v52  ;;  %v586_v56 = vpop.f32.mrb[6].mxu0 }
 0x100   :  { %v587_v57 = vpop.f32.mrb[7].mxu0 }
 0x101   :  { %v355_v58 = vadd.f32 %v627_v42, %v585_v55  ;;  %v588_v59 = vadd.f32 %v587_v57, %v586_v56  ;;  %645 = vmatprep.mubr.bf16.mxu0 %v380_v54 }
 0x103   :  { %v358_v60 = vadd.f32 %v628_v47, %v588_v59  ;;  %v378_v61 = vmax.f32 %v355_v58, 0.0 }
 0x105   :  { %v379_v62 = vmax.f32 %v358_v60, 0.0 }
 0x107   :  { %v381_v63 = vpack.c.bf16 %v379_v62, %v378_v61 }
 0x109   :  { %646 = vmatmul.mubr.bf16.vlgmr.msra.gmra.mrb[8].mxu0 %v381_v63 }
 0x1dc   :  { %v647_v2 = vpop.f32.mrb[8].mxu0 }
 0x1dd   :  { %v493_v4 = vadd.f32 %v647_v2, %v400_v0  ;;  %v484_v5 = vpop.f32.mrb[9].mxu0 }
 0x1de   :  { %v485_v7 = vadd.f32 %v484_v5, %v398_v1  ;;  %v648_v8 = vpop.f32.mrb[10].mxu0 }
 0x1df   :  { %v501_v9 = vmax.f32 %v493_v4, 0.0  ;;  %v496_v10 = vadd.f32 %v648_v8, %v401_v3  ;;  %v487_v11 = vpop.f32.mrb[11].mxu0 }
 0x1e0   :  { %v499_v12 = vmax.f32 %v485_v7, 0.0  ;;  %v488_v13 = vadd.f32 %v487_v11, %v399_v6 }
 0x1e1   :  { %505 = vst [vmem:[#allocation3 + $0x10] sm:$0xff] %v501_v9  ;;  %v502_v14 = vmax.f32 %v496_v10, 0.0 }
 0x1e2   :  { %503 = vst [vmem:[#allocation3] sm:$0xff] %v499_v12  ;;  %v500_v15 = vmax.f32 %v488_v13, 0.0 }
 0x1e3   :  { %506 = vst [vmem:[#allocation3 + $0x18] sm:$0xff] %v502_v14 }
 0x1e4   :  { %504 = vst [vmem:[#allocation3 + $0x8] sm:$0xff] %v500_v15 }
 0x1e5   :  { %703 = shalt.err (!%p700_p4)
}
 0x1e6   :  { %s704_s22 = scalar_lea.hbm %s886_s4, 512 }
 0x1e7   :  { %p705_p5 = scmp.ne.s32.totalorder %s886_s4, %s704_s22  ;;  %p708_p6 = scmp.lt.u32.totalorder %s704_s22, %s886_s4 }
 0x1e9   :  { %p710_p7 = pnand %p708_p6, %p705_p5 }
 0x1eb   :  { %713 = shalt.err (!%p710_p7)
}
 0x1ec   :  { %s717_s26 = smov 128   ;;  %s718_s27 = smov 8  }
 0x1ed   :  { %518 = dma.vmem_to_hbm [thread:$0]  %s513_s19, 512, %s886_s4, [#allocation4], %s717_s26, %s717_s26, %s718_s27  }
 0x1ee   :  { %714 = dma.done.wait [#allocation4], 512  }
 0x1ef   :  { %715 = vsyncadd [#allocation4], 4294966784 }
 0x1f0   :  { %522 = vsyncpa [#allocation4], 1 }

// kernel: encoder_forward.8
= control target key start
LH: loop header
LB: loop body
LE: loop exit
PB: predicated region body
PF: predicated region fallthrough
CT: control target
= control target key end

     0   :  { %s835_s1 = inlined_call_operand.vmem [shape: bf16[384,128], index: 1, kind: input, shape index: {}]   ;;  %s836_s0 = inlined_call_operand.vmem [shape: bf16[32,384], index: 0, kind: input, shape index: {}]   ;;  %s837_s2 = inlined_call_operand.vmem [shape: bf16[128,128], index: 2, kind: input, shape index: {}]   ;;  %s838_s3 = inlined_call_operand.vmem [shape: f32[32,128], index: 3, kind: input, shape index: {}]   ;;  %s839_s4 = inlined_call_operand.vmem [shape: f32[32,128], index: 4, kind: output, shape index: {}]  }
   0x1   :  { %v632_v0 = vld [vmem:[%s835_s1 + $0x40] sm:$0xff]   ;;  %v635_v3 = vld [vmem:[%s835_s1 + $0x48] sm:$0xff]   ;;  %v638_v6 = vld [vmem:[%s835_s1 + $0x50] sm:$0xff]  }
   0x2   :  { %v633_v1 = vld [vmem:[%s835_s1] sm:$0xff]   ;;  %544 = vmatprep.subr.bf16.mxu0 %v632_v0  ;;  %v636_v4 = vld [vmem:[%s835_s1 + $0x8] sm:$0xff]   ;;  %v639_v7 = vld [vmem:[%s835_s1 + $0x10] sm:$0xff]  }
   0x3   :  { %v634_v2 = vld [vmem:[%s835_s1 + $0x80] sm:$0xff]   ;;  %545 = vmatpush3.bf16.msra.mxu0 %v633_v1  ;;  %v637_v5 = vld [vmem:[%s835_s1 + $0x88] sm:$0xff]   ;;  %v640_v8 = vld [vmem:[%s835_s1 + $0x90] sm:$0xff]  }
   0x4   :  { %592 = vmatprep.subr.bf16.mxu1 %v634_v2  ;;  %546 = vmatprep.subr.bf16.mxu0 %v635_v3  ;;  %v641_v9 = vld [vmem:[%s835_s1 + $0x58] sm:$0xff]   ;;  %v644_v12 = vld [vmem:[%s835_s1 + $0x60] sm:$0xff]   ;;  %v647_v15 = vld [vmem:[%s835_s1 + $0x68] sm:$0xff]  }
   0x5   :  { %593 = vmatpush3.bf16.msra.mxu1 %v634_v2  ;;  %v642_v10 = vld [vmem:[%s835_s1 + $0x18] sm:$0xff]   ;;  %v646_v13 = vld [vmem:[%s835_s1 + $0xa0] sm:$0xff]   ;;  %v649_v16 = vld [vmem:[%s835_s1 + $0xa8] sm:$0xff]  }
   0x6   :  { %594 = vmatprep.subr.bf16.mxu1 %v637_v5  ;;  %v643_v11 = vld [vmem:[%s835_s1 + $0x98] sm:$0xff]   ;;  %v645_v14 = vld [vmem:[%s835_s1 + $0x20] sm:$0xff]   ;;  %v648_v17 = vld [vmem:[%s835_s1 + $0x28] sm:$0xff]  }
   0x7   :  { %547 = vmatpush3.bf16.msra.mxu0 %v636_v4  ;;  %v650_v18 = vld [vmem:[%s835_s1 + $0x70] sm:$0xff]   ;;  %v653_v21 = vld [vmem:[%s835_s1 + $0x78] sm:$0xff]   ;;  %v656_v26 = vld [vmem:[%s836_s0] ss:$12 sps:$4 sm:$0xff]  }
   0x8   :  { %548 = vmatprep.subr.bf16.mxu0 %v638_v6  ;;  %v651_v19 = vld [vmem:[%s835_s1 + $0x30] sm:$0xff]   ;;  %v655_v22 = vld [vmem:[%s835_s1 + $0xb8] sm:$0xff]   ;;  %v664_v27 = vld [vmem:[%s837_s2] sm:$0xff]  }
   0x9   :  { %595 = vmatpush3.bf16.msra.mxu1 %v637_v5  ;;  %v652_v20 = vld [vmem:[%s835_s1 + $0xb0] sm:$0xff]   ;;  %v654_v25 = vld [vmem:[%s835_s1 + $0x38] sm:$0xff]   ;;  %v660_v28 = vld [vmem:[%s836_s0 + $0x20] ss:$12 sps:$4 sm:$0xff]  }
   0xa   :  { %596 = vmatprep.subr.bf16.mxu1 %v640_v8  ;;  %v658_v23 = vld [vmem:[%s836_s0 + $0x4] ss:$12 sps:$4 sm:$0xff]   ;;  %v659_v24 = vld [vmem:[%s836_s0 + $0x8] ss:$12 sps:$4 sm:$0xff]   ;;  %v667_v33 = vld [vmem:[%s837_s2 + $0x18] sm:$0xff]  }
   0xb   :  { %549 = vmatpush3.bf16.msra.mxu0 %v639_v7  ;;  %294 = vmatprep.mubr.bf16.mxu0 %v658_v23  ;;  %v661_v29 = vld [vmem:[%s836_s0 + $0x1c] ss:$12 sps:$4 sm:$0xff]   ;;  %v666_v31 = vld [vmem:[%s837_s2 + $0x10] sm:$0xff]   ;;  %v663_v32 = vld [vmem:[%s836_s0 + $0x18] ss:$12 sps:$4 sm:$0xff]  }
   0xc   :  { %550 = vmatprep.subr.bf16.mxu0 %v641_v9  ;;  %608 = vmatprep.mubr.bf16.mxu1 %v659_v24  ;;  %v665_v30 = vld [vmem:[%s837_s2 + $0x8] sm:$0xff]   ;;  %v668_v34 = vld [vmem:[%s837_s2 + $0x20] sm:$0xff]   ;;  %v670_v36 = vld [vmem:[%s837_s2 + $0x30] sm:$0xff]  }
   0xd   :  { %597 = vmatpush3.bf16.msra.mxu1 %v640_v8  ;;  %v669_v35 = vld [vmem:[%s837_s2 + $0x28] sm:$0xff]   ;;  %v671_v37 = vld [vmem:[%s837_s2 + $0x38] sm:$0xff]   ;;  %v399_v0 = vld [vmem:[%s838_s3 + $0x10] sm:$0xff] }
   0xe   :  { %598 = vmatprep.subr.bf16.mxu1 %v643_v11  ;;  %v397_v1 = vld [vmem:[%s838_s3] sm:$0xff]  ;;  %v400_v3 = vld [vmem:[%s838_s3 + $0x18] sm:$0xff]  ;;  %v398_v6 = vld [vmem:[%s838_s3 + $0x8] sm:$0xff] }
   0xf   :  { %551 = vmatpush3.bf16.msra.mxu0 %v642_v10 }
  0x10   :  { %552 = vmatprep.subr.bf16.mxu0 %v644_v12 }
  0x11   :  { %599 = vmatpush3.bf16.msra.mxu1 %v643_v11 }
  0x12   :  { %600 = vmatprep.subr.bf16.mxu1 %v646_v13 }
  0x13   :  { %553 = vmatpush3.bf16.msra.mxu0 %v645_v14 }
  0x14   :  { %554 = vmatprep.subr.bf16.mxu0 %v647_v15 }
  0x15   :  { %601 = vmatpush3.bf16.msra.mxu1 %v646_v13 }
  0x16   :  { %602 = vmatprep.subr.bf16.mxu1 %v649_v16 }
  0x17   :  { %555 = vmatpush3.bf16.msra.mxu0 %v648_v17 }
  0x18   :  { %556 = vmatprep.subr.bf16.mxu0 %v650_v18 }
  0x19   :  { %603 = vmatpush3.bf16.msra.mxu1 %v649_v16 }
  0x1a   :  { %604 = vmatprep.subr.bf16.mxu1 %v652_v20 }
  0x1b   :  { %557 = vmatpush3.bf16.msra.mxu0 %v651_v19 }
  0x1c   :  { %558 = vmatprep.subr.bf16.mxu0 %v653_v21 }
  0x1d   :  { %605 = vmatpush3.bf16.msra.mxu1 %v652_v20 }
  0x1e   :  { %606 = vmatprep.subr.bf16.mxu1 %v655_v22 }
  0x1f   :  { %559 = vmatpush3.bf16.msra.mxu0 %v654_v25 }
  0x20   :  { %612 = vmatprep.subr.bf16.mxu0 %v664_v27 }
  0x21   :  { %607 = vmatpush3.bf16.msra.mxu1 %v655_v22 }
  0x22   :  { %295 = vmatmul.mubr.bf16.vlgmr.msra.gmra.mrb[0].mxu0 %v656_v26 }
  0x23   :  { %302 = vmatprep.mubr.bf16.mxu0 %v661_v29  ;;  %613 = vmatpush3.bf16.msra.mxu0 %v664_v27 }
  0x24   :  { %609 = vmatmul.mubr.bf16.vlgmr.msra.gmra.mrb[0].mxu1 %v660_v28  ;;  %614 = vmatprep.subr.bf16.mxu0 %v665_v30 }
  0x27   :  { %615 = vmatpush3.bf16.msra.mxu0 %v665_v30 }
  0x28   :  { %616 = vmatprep.subr.bf16.mxu0 %v666_v31 }
  0x2a   :  { %303 = vmatmul.mubr.bf16.gmra.mrb[4].mxu0 %v663_v32 }
  0x2b   :  { %617 = vmatpush3.bf16.msra.mxu0 %v666_v31 }
  0x2c   :  { %618 = vmatprep.subr.bf16.mxu0 %v667_v33 }
  0x2f   :  { %619 = vmatpush3.bf16.msra.mxu0 %v667_v33 }
  0x30   :  { %620 = vmatprep.subr.bf16.mxu0 %v668_v34 }
  0x33   :  { %621 = vmatpush3.bf16.msra.mxu0 %v668_v34 }
  0x34   :  { %622 = vmatprep.subr.bf16.mxu0 %v669_v35 }
  0x37   :  { %623 = vmatpush3.bf16.msra.mxu0 %v669_v35 }
  0x38   :  { %624 = vmatprep.subr.bf16.mxu0 %v670_v36 }
  0x3b   :  { %625 = vmatpush3.bf16.msra.mxu0 %v670_v36 }
  0x3c   :  { %626 = vmatprep.subr.bf16.mxu0 %v671_v37 }
  0x3f   :  { %627 = vmatpush3.bf16.msra.mxu0 %v671_v37 }
  0xf5   :  { %v560_v38 = vpop.f32.mrb[0].mxu0 }
  0xf6   :  { %v561_v39 = vpop.f32.mrb[1].mxu0 }
  0xf7   :  { %v562_v40 = vadd.f32 %v561_v39, %v560_v38  ;;  %v563_v41 = vpop.f32.mrb[2].mxu0  ;;  %v610_v42 = vpop.f32.mrb[0].mxu1 }
  0xf8   :  { %v564_v43 = vpop.f32.mrb[3].mxu0  ;;  %v345_v44 = vpop.f32.mrb[1].mxu1 }
  0xf9   :  { %v565_v45 = vadd.f32 %v564_v43, %v563_v41  ;;  %v346_v46 = vadd.f32 %v562_v40, %v345_v44  ;;  %v611_v47 = vpop.f32.mrb[2].mxu1 }
  0xfa   :  { %v348_v48 = vpop.f32.mrb[3].mxu1 }
  0xfb   :  { %v349_v49 = vadd.f32 %v565_v45, %v348_v48  ;;  %v375_v50 = vmax.f32 %v346_v46, 0.0 }
  0xfd   :  { %v376_v51 = vmax.f32 %v349_v49, 0.0  ;;  %v566_v52 = vpop.f32.mrb[4].mxu0 }
  0xfe   :  { %v567_v53 = vpop.f32.mrb[5].mxu0 }
  0xff   :  { %v379_v54 = vpack.c.bf16 %v376_v51, %v375_v50  ;;  %v568_v55 = vadd.f32 %v567_v53, %v566_v52  ;;  %v569_v56 = vpop.f32.mrb[6].mxu0 }
 0x100   :  { %v570_v57 = vpop.f32.mrb[7].mxu0 }
 0x101   :  { %v354_v58 = vadd.f32 %v610_v42, %v568_v55  ;;  %v571_v59 = vadd.f32 %v570_v57, %v569_v56  ;;  %628 = vmatprep.mubr.bf16.mxu0 %v379_v54 }
 0x103   :  { %v357_v60 = vadd.f32 %v611_v47, %v571_v59  ;;  %v377_v61 = vmax.f32 %v354_v58, 0.0 }
 0x105   :  { %v378_v62 = vmax.f32 %v357_v60, 0.0 }
 0x107   :  { %v380_v63 = vpack.c.bf16 %v378_v62, %v377_v61 }
 0x109   :  { %629 = vmatmul.mubr.bf16.vlgmr.msra.gmra.mrb[8].mxu0 %v380_v63 }
 0x1dc   :  { %v630_v2 = vpop.f32.mrb[8].mxu0 }
 0x1dd   :  { %v492_v4 = vadd.f32 %v630_v2, %v399_v0  ;;  %v483_v5 = vpop.f32.mrb[9].mxu0 }
 0x1de   :  { %v484_v7 = vadd.f32 %v483_v5, %v397_v1  ;;  %v631_v8 = vpop.f32.mrb[10].mxu0 }
 0x1df   :  { %500 = vst [vmem:[%s839_s4 + $0x10] sm:$0xff] %v492_v4  ;;  %v495_v9 = vadd.f32 %v631_v8, %v400_v3  ;;  %v486_v10 = vpop.f32.mrb[11].mxu0 }
 0x1e0   :  { %498 = vst [vmem:[%s839_s4] sm:$0xff] %v484_v7  ;;  %v487_v11 = vadd.f32 %v486_v10, %v398_v6 }
 0x1e1   :  { %501 = vst [vmem:[%s839_s4 + $0x18] sm:$0xff] %v495_v9 }
 0x1e2   :  { %499 = vst [vmem:[%s839_s4 + $0x8] sm:$0xff] %v487_v11 }

</bundles_post_ra>
